<compile_context>
chip_gen: v7x
topology: tpu7x:2x2x1
jax: 0.10.0
libtpu: 0.0.40
codegen_flags: <defaults>
</compile_context>

<pallas_src>
import functools

import jax
import jax.numpy as jnp
from jax.experimental import pallas as pl
from jax.experimental.pallas import tpu as pltpu

LANE = 128  # TPU lane width; all feature slabs are padded to this.


# ---------------------------------------------------------------------------
# Small helpers
# ---------------------------------------------------------------------------
def _ru(x, m):
    return ((x + m - 1) // m) * m


def _pad2(a, rows, cols, dtype):
    r, c = a.shape
    return jnp.pad(a, ((0, rows - r), (0, cols - c))).astype(dtype)


def _nbytes(x):
    return int(x.size) * jnp.dtype(x.dtype).itemsize


def _vmem_limit(*arrays):
    total = sum(_nbytes(a) for a in arrays)
    return int(min(100 * 1024 * 1024,
                   max(2 * total + 4 * 1024 * 1024, 32 * 1024 * 1024)))


# ---------------------------------------------------------------------------
# Encoder kernel: DTPGCN + BiATT + CPropATT + (folded fc_3/fc_mean/fc_logstd)
# + reparameterize.  One grid step = TM drug-node rows.
# ---------------------------------------------------------------------------
def _encoder_kernel(a_ref, xd_ref, xt_ref, xp_ref,
                    wd_ref, bd_ref, wt_ref, bt_ref, wp_ref, bp_ref,
                    watt_ref, whead_ref, bhead_ref, eps_ref,
                    ml_ref, z_ref, *, n_tgt, n_prp):
    f32, bf16 = jnp.float32, jnp.bfloat16

    # TODO(synk): exact DTPGCN architecture unspecified in the reference;
    # realized as one GCN layer (drug graph) + linear encoders (target, prop).
    # Drug GCN layer, (A @ X) @ W order (lane-dense, padded cols are zero).
    ax = jnp.dot(a_ref[...], xd_ref[...], preferred_element_type=f32)
    x_drug = jnp.maximum(
        jnp.dot(ax.astype(bf16), wd_ref[...], preferred_element_type=f32)
        + bd_ref[...], 0.0)

    # Target / property encoders (recomputed per tile; tiny vs. the Nd^2 term).
    x_tgt = jnp.maximum(
        jnp.dot(xt_ref[...], wt_ref[...], preferred_element_type=f32)
        + bt_ref[...], 0.0)
    x_prp = jnp.maximum(
        jnp.dot(xp_ref[...], wp_ref[...], preferred_element_type=f32)
        + bp_ref[...], 0.0)

    # Both bilinear attention queries from one 256-lane matmul; each half is
    # padded to a 128-lane boundary so these slices are free.
    qw = jnp.dot(x_drug.astype(bf16), watt_ref[...], preferred_element_type=f32)

    def attend(q, k, n_valid):
        kb = k.astype(bf16)
        # scores = q @ k^T, contracting dim 1 on both (no XLU transpose).
        s = jax.lax.dot_general(q.astype(bf16), kb, (((1,), (1,)), ((), ())),
                                preferred_element_type=f32)
        col = jax.lax.broadcasted_iota(jnp.int32, s.shape, 1)
        s = jnp.where(col < n_valid, s, -1e30)        # mask padded keys
        s = s - jnp.max(s, axis=-1, keepdims=True)
        p = jnp.exp(s)
        p = p * pl.reciprocal(jnp.sum(p, axis=-1, keepdims=True), approx=False)
        return jnp.dot(p.astype(bf16), kb, preferred_element_type=f32)

    x_drug_t = attend(qw[:, :LANE], x_tgt, n_tgt)     # BiATT
    x_drug_p = attend(qw[:, LANE:], x_prp, n_prp)     # CPropATT

    # fc_3 folded into fc_mean|fc_logstd (exact: no nonlinearity in between).
    ml = jnp.dot((x_drug_t + x_drug_p).astype(bf16), whead_ref[...],
                 preferred_element_type=f32) + bhead_ref[...]
    ml_ref[...] = ml                                  # lane-dense [TM, 256]

    # reparameterize: z = mean + eps * exp(0.5 * logstd)   (128-aligned slices)
    z = ml[:, :LANE] + eps_ref[...] * jnp.exp(0.5 * ml[:, LANE:])
    z_ref[...] = z.astype(z_ref.dtype)                # lane-dense [TM, 128]


# ---------------------------------------------------------------------------
# Generic row-tiled GCNConv kernel: out_tile = act((A_tile @ X_full) @ W + b)
# ---------------------------------------------------------------------------
def _gcn_kernel(a_ref, x_ref, w_ref, b_ref, o_ref, *, apply_relu):
    f32, bf16 = jnp.float32, jnp.bfloat16
    ax = jnp.dot(a_ref[...], x_ref[...], preferred_element_type=f32)
    y = jnp.dot(ax.astype(bf16), w_ref[...], preferred_element_type=f32)
    y = y + b_ref[...]
    if apply_relu:
        y = jnp.maximum(y, 0.0)
    o_ref[...] = y.astype(o_ref.dtype)


def _gcn_conv(a_pad, x_full, w, b, *, tm, out_dtype, apply_relu):
    ndp = a_pad.shape[0]
    args = (a_pad, x_full, w, b)
    flops = 2 * ndp * ndp * LANE + 2 * ndp * LANE * LANE
    bytes_acc = sum(_nbytes(x) for x in args) + ndp * LANE * jnp.dtype(out_dtype).itemsize
    return pl.pallas_call(
        functools.partial(_gcn_kernel, apply_relu=apply_relu),
        out_shape=jax.ShapeDtypeStruct((ndp, LANE), out_dtype),
        grid=(ndp // tm,),
        in_specs=[
            pl.BlockSpec((tm, ndp), lambda i: (i, 0)),      # A_hat row tile
            pl.BlockSpec((ndp, LANE), lambda i: (0, 0)),    # full z / h slab
            pl.BlockSpec((LANE, LANE), lambda i: (0, 0)),
            pl.BlockSpec((1, LANE), lambda i: (0, 0)),
        ],
        out_specs=pl.BlockSpec((tm, LANE), lambda i: (i, 0)),
        compiler_params=pltpu.CompilerParams(
            dimension_semantics=("parallel",),
            vmem_limit_bytes=_vmem_limit(*args)),
        cost_estimate=pl.CostEstimate(flops=int(flops), transcendentals=0,
                                      bytes_accessed=int(bytes_acc)),
    )(*args)


# ---------------------------------------------------------------------------
# Wrapper: pad / fuse / fold weights (glue), three row-tiled pallas_calls.
# Multi-graph batching works unchanged via a block-diagonal A_hat.
# ---------------------------------------------------------------------------
def vgae_att_forward(params, data, eps, *, tm=8):
    f32, bf16 = jnp.float32, jnp.bfloat16
    latent = params["w_fc3"].shape[0]
    hidden = params["w_conv1"].shape[1]
    x_in = params["w_conv2"].shape[1]
    prot_dim = params["w_tgt"].shape[0]
    prop_dim = params["w_prop"].shape[0]
    assert latent <= LANE and hidden <= LANE and x_in <= LANE

    nd = data["x_drug"].shape[0]
    nt = data["x_target"].shape[0]
    npr = data["x_prop"].shape[0]

    tm = max(8, tm)
    ndp = _ru(nd, tm)                 # drug nodes padded to the row-tile size
    ntp = _ru(nt, LANE)               # lane-dense attention keys (masked)
    npp = _ru(npr, LANE)
    xdp = _ru(x_in, LANE)

    # ---- pad inputs (bf16 MXU operands; eps stays f32) ----
    a_pad = _pad2(data["a_drug_hat"], ndp, ndp, bf16)
    xd_pad = _pad2(data["x_drug"], ndp, xdp, bf16)
    xt_pad = _pad2(data["x_target"], ntp, prot_dim, bf16)
    xp_pad = _pad2(data["x_prop"], npp, prop_dim, bf16)
    eps_pad = _pad2(eps, ndp, LANE, f32)

    # ---- pad / fuse / fold weights ----
    wd = _pad2(params["w_drug"], xdp, LANE, bf16)
    bd = _pad2(params["b_drug"], 1, LANE, f32)
    wt = _pad2(params["w_tgt"], prot_dim, LANE, bf16)
    bt = _pad2(params["b_tgt"], 1, LANE, f32)
    wp = _pad2(params["w_prop"], prop_dim, LANE, bf16)
    bp = _pad2(params["b_prop"], 1, LANE, f32)

    # BiATT | CPropATT weights fused, each half padded to a 128-lane boundary.
    w_att = jnp.concatenate([_pad2(params["w_biatt"], LANE, LANE, bf16),
                             _pad2(params["w_propatt"], LANE, LANE, bf16)], axis=1)

    # fc_3 folded into fc_mean / fc_logstd (exact; f32 fold, then bf16 cast).
    wm = params["w_fc3"] @ params["w_mean"]
    wl = params["w_fc3"] @ params["w_lstd"]
    bm = params["b_fc3"] @ params["w_mean"] + params["b_mean"]
    bl = params["b_fc3"] @ params["w_lstd"] + params["b_lstd"]
    w_head = jnp.concatenate([_pad2(wm, LANE, LANE, bf16),
                              _pad2(wl, LANE, LANE, bf16)], axis=1)
    b_head = jnp.concatenate([_pad2(bm, 1, LANE, f32),
                              _pad2(bl, 1, LANE, f32)], axis=1)

    wc1 = _pad2(params["w_conv1"], LANE, LANE, bf16)
    bc1 = _pad2(params["b_conv1"], 1, LANE, f32)
    wc2 = _pad2(params["w_conv2"], LANE, LANE, bf16)
    bc2 = _pad2(params["b_conv2"], 1, LANE, f32)

    full = lambda arr: pl.BlockSpec(arr.shape, lambda i: (0,) * arr.ndim)
    row_tile = lambda width: pl.BlockSpec((tm, width), lambda i: (i, 0))

    enc_args = (a_pad, xd_pad, xt_pad, xp_pad, wd, bd, wt, bt, wp, bp,
                w_att, w_head, b_head, eps_pad)
    enc_flops = (2 * ndp * ndp * xdp + 2 * ndp * LANE * 5 * LANE
                 + 4 * ndp * (ntp + npp) * LANE)
    enc_trans = ndp * (ntp + npp) + ndp * LANE
    enc_bytes = sum(_nbytes(x) for x in enc_args) + ndp * (2 * LANE * 4 + LANE * 2)

    ml, z = pl.pallas_call(
        functools.partial(_encoder_kernel, n_tgt=nt, n_prp=npr),
        out_shape=(jax.ShapeDtypeStruct((ndp, 2 * LANE), f32),   # mean|logstd
                   jax.ShapeDtypeStruct((ndp, LANE), bf16)),     # z
        grid=(ndp // tm,),
        in_specs=[row_tile(ndp), full(xd_pad), full(xt_pad), full(xp_pad),
                  full(wd), full(bd), full(wt), full(bt), full(wp), full(bp),
                  full(w_att), full(w_head), full(b_head), row_tile(LANE)],
        out_specs=(row_tile(2 * LANE), row_tile(LANE)),
        compiler_params=pltpu.CompilerParams(
            dimension_semantics=("parallel",),
            vmem_limit_bytes=_vmem_limit(*enc_args)),
        cost_estimate=pl.CostEstimate(flops=int(enc_flops),
                                      transcendentals=int(enc_trans),
                                      bytes_accessed=int(enc_bytes)),
    )(*enc_args)

    # decoder: GCNConv -> relu -> GCNConv (each needs z / h at all nodes).
    h = _gcn_conv(a_pad, z, wc1, bc1, tm=tm, out_dtype=bf16, apply_relu=True)
    xr = _gcn_conv(a_pad, h, wc2, bc2, tm=tm, out_dtype=f32, apply_relu=False)

    mean = ml[:nd, :latent]
    logstd = ml[:nd, LANE:LANE + latent]
    x_recon = xr[:nd, :x_in]
    return x_recon, mean, logstd


# ---------------------------------------------------------------------------
# Pure-JAX f32 reference (mirrors the module structure) + glue
# ---------------------------------------------------------------------------
def vgae_att_reference(params, data, eps):
    relu = lambda x: jnp.maximum(x, 0.0)
    a = data["a_drug_hat"]
    x_drug = relu(a @ (data["x_drug"] @ params["w_drug"]) + params["b_drug"])
    x_tgt = relu(data["x_target"] @ params["w_tgt"] + params["b_tgt"])
    x_prp = relu(data["x_prop"] @ params["w_prop"] + params["b_prop"])

    def attend(q, w, k):
        p = jax.nn.softmax((q @ w) @ k.T, axis=-1)
        return p @ k

    x_drug_t = attend(x_drug, params["w_biatt"], x_tgt)
    x_drug_p = attend(x_drug, params["w_propatt"], x_prp)
    xf = (x_drug_t + x_drug_p) @ params["w_fc3"] + params["b_fc3"]
    mean = xf @ params["w_mean"] + params["b_mean"]
    logstd = xf @ params["w_lstd"] + params["b_lstd"]
    z = mean + eps * jnp.exp(0.5 * logstd)
    h = relu(a @ (z @ params["w_conv1"]) + params["b_conv1"])
    x_recon = a @ (h @ params["w_conv2"]) + params["b_conv2"]
    return x_recon, mean, logstd


def normalized_adj(edge_index, n):
    a = jnp.zeros((n, n), jnp.float32)
    a = a.at[edge_index[0], edge_index[1]].set(1.0)
    a = a + jnp.eye(n, dtype=jnp.float32)          # self loops
    d = jnp.sum(a, axis=1)
    dinv = 1.0 / jnp.sqrt(d)
    return a * dinv[:, None] * dinv[None, :]


def init_params(key, *, x_input_dim, prot_dim, prop_feat_dim, latent_dim, hidden_dim):
    ks = jax.random.split(key, 16)

    def w(k, shape, scale=0.1):
        return (scale * jax.random.normal(k, shape)).astype(jnp.float32)

    def b(shape):
        return jnp.zeros((1,) + shape, jnp.float32)

    return {
        # TODO(synk): exact DTPGCN internals unspecified; GCN layer + linear encoders.
        "w_drug": w(ks[0], (x_input_dim, latent_dim)), "b_drug": b((latent_dim,)),
        "w_tgt":  w(ks[1], (prot_dim, latent_dim)),    "b_tgt":  b((latent_dim,)),
        "w_prop": w(ks[2], (prop_feat_dim, latent_dim)), "b_prop": b((latent_dim,)),
        # BiATT / CPropATT bilinear forms
        "w_biatt":   w(ks[3], (latent_dim, latent_dim)),
        "w_propatt": w(ks[4], (latent_dim, latent_dim)),
        # VAE head
        "w_fc3":  w(ks[5], (latent_dim, latent_dim)), "b_fc3":  b((latent_dim,)),
        "w_mean": w(ks[6], (latent_dim, latent_dim)), "b_mean": b((latent_dim,)),
        "w_lstd": w(ks[7], (latent_dim, latent_dim)), "b_lstd": b((latent_dim,)),
        # decoder GCNConvs
        "w_conv1": w(ks[8], (latent_dim, hidden_dim)),  "b_conv1": b((hidden_dim,)),
        "w_conv2": w(ks[9], (hidden_dim, x_input_dim)), "b_conv2": b((x_input_dim,)),
    }


# ---------------------------------------------------------------------------
# Example run
# ---------------------------------------------------------------------------
if __name__ == "__main__":
    X_INPUT_DIM = 2      # self.x_input_dim
    PROT_DIM = 16        # prot_dim
    PROP_FEAT_DIM = 8    # raw property feature width
    LATENT_DIM = 32      # latent_dim
    HIDDEN_DIM = 48      # hidden_dim
    N_DRUG = 30          # smile-graph nodes (padded to 32 -> 4 row tiles)
    N_TARGET = 10        # target nodes (padded to 128 keys, masked)
    N_PROP = 6           # property nodes

    key = jax.random.PRNGKey(0)
    k_par, k_xd, k_xt, k_xp, k_eps = jax.random.split(key, 5)

    params = init_params(
        k_par,
        x_input_dim=X_INPUT_DIM, prot_dim=PROT_DIM, prop_feat_dim=PROP_FEAT_DIM,
        latent_dim=LATENT_DIM, hidden_dim=HIDDEN_DIM)

    # deterministic synthetic "data" object (ring drug graph)
    ring_src = jnp.arange(N_DRUG, dtype=jnp.int32)
    ring_dst = (ring_src + 1) % N_DRUG
    smile_edge_index = jnp.stack(
        [jnp.concatenate([ring_src, ring_dst]),
         jnp.concatenate([ring_dst, ring_src])], axis=0)

    data = {
        "x_drug": jax.random.normal(k_xd, (N_DRUG, X_INPUT_DIM), jnp.float32),
        "x_target": jax.random.normal(k_xt, (N_TARGET, PROT_DIM), jnp.float32),
        "x_prop": jax.random.normal(k_xp, (N_PROP, PROP_FEAT_DIM), jnp.float32),
        "a_drug_hat": normalized_adj(smile_edge_index, N_DRUG),
    }

    # epsilon for the reparameterization trick (glue-side RNG, used in-kernel)
    # TODO(synk): dropout_1 / dropout_2 omitted (inference-mode identity).
    eps = jax.random.normal(k_eps, (N_DRUG, LATENT_DIM), jnp.float32)

    fwd = jax.jit(vgae_att_forward)
    x_recon, mean, logstd = fwd(params, data, eps)
    jax.block_until_ready((x_recon, mean, logstd))

    assert x_recon.shape == (N_DRUG, X_INPUT_DIM)
    assert mean.shape == (N_DRUG, LATENT_DIM)
    assert logstd.shape == (N_DRUG, LATENT_DIM)

    # correctness vs. pure-JAX f32 reference (tolerance absorbs bf16 matmuls)
    xr_r, mean_r, lstd_r = vgae_att_reference(params, data, eps)
    for got, want in ((x_recon, xr_r), (mean, mean_r), (logstd, lstd_r)):
        err = float(jnp.max(jnp.abs(got - want)))
        assert err < 2e-2, f"mismatch vs reference: max abs err {err}"

    print("KERNEL_OK")
</pallas_src>

<mosaic_0001>
module attributes {stable_mosaic.version = 11 : i64} {
  func.func @_gcn_kernel(%arg0: i32, %arg1: memref<8x32xbf16, #tpu.memory_space<vmem>>, %arg2: memref<32x128xbf16, #tpu.memory_space<vmem>>, %arg3: memref<128x128xbf16, #tpu.memory_space<vmem>>, %arg4: memref<1x128xf32, #tpu.memory_space<vmem>>, %arg5: memref<8x128xbf16, #tpu.memory_space<vmem>>) attributes {dimension_semantics = [#tpu.dimension_semantics<parallel>], iteration_bounds = array<i64: 4>, scalar_prefetch = 0 : i64, scratch_operands = 0 : i64, tpu.core_type = #tpu.core_type<tc>, window_params = [{transform_indices = @transform_0, window_bounds = array<i64: 8, 32>}, {pipeline_mode = #tpu.pipeline_mode<synchronous>, transform_indices = @transform_1, window_bounds = array<i64: 32, 128>}, {pipeline_mode = #tpu.pipeline_mode<synchronous>, transform_indices = @transform_2, window_bounds = array<i64: 128, 128>}, {pipeline_mode = #tpu.pipeline_mode<synchronous>, transform_indices = @transform_3, window_bounds = array<i64: 1, 128>}, {transform_indices = @transform_4, window_bounds = array<i64: 8, 128>}]} {
    %c0 = arith.constant 0 : index
    %c0_0 = arith.constant 0 : index
    %0 = vector.load %arg1[%c0, %c0_0] : memref<8x32xbf16, #tpu.memory_space<vmem>>, vector<8x32xbf16>
    %c0_1 = arith.constant 0 : index
    %c0_2 = arith.constant 0 : index
    %1 = vector.load %arg2[%c0_1, %c0_2] : memref<32x128xbf16, #tpu.memory_space<vmem>>, vector<32x128xbf16>
    %cst = arith.constant dense<0.000000e+00> : vector<8x128xf32>
    %2 = tpu.matmul %0, %1, %cst {dimension_numbers = #tpu.dot_dimension_numbers<[1], [0], [0], [1], [0, 0, 1, 1], [], []>} : vector<8x32xbf16>, vector<32x128xbf16>, vector<8x128xf32> -> vector<8x128xf32>
    %3 = arith.truncf %2 : vector<8x128xf32> to vector<8x128xbf16>
    %c0_3 = arith.constant 0 : index
    %c0_4 = arith.constant 0 : index
    %4 = vector.load %arg3[%c0_3, %c0_4] : memref<128x128xbf16, #tpu.memory_space<vmem>>, vector<128x128xbf16>
    %cst_5 = arith.constant dense<0.000000e+00> : vector<8x128xf32>
    %5 = tpu.matmul %3, %4, %cst_5 {dimension_numbers = #tpu.dot_dimension_numbers<[1], [0], [0], [1], [0, 0, 1, 1], [], []>} : vector<8x128xbf16>, vector<128x128xbf16>, vector<8x128xf32> -> vector<8x128xf32>
    %c0_6 = arith.constant 0 : index
    %c0_7 = arith.constant 0 : index
    %6 = vector.load %arg4[%c0_6, %c0_7] : memref<1x128xf32, #tpu.memory_space<vmem>>, vector<1x128xf32>
    %7 = vector.broadcast %6 : vector<1x128xf32> to vector<8x128xf32>
    %8 = arith.addf %5, %7 : vector<8x128xf32>
    %cst_8 = arith.constant 0.000000e+00 : f32
    %9 = vector.broadcast %cst_8 : f32 to vector<8x128xf32>
    %10 = arith.maximumf %8, %9 : vector<8x128xf32>
    %11 = arith.truncf %10 : vector<8x128xf32> to vector<8x128xbf16>
    %c0_9 = arith.constant 0 : index
    %c0_10 = arith.constant 0 : index
    %12 = vector.load %arg5[%c0_9, %c0_10] : memref<8x128xbf16, #tpu.memory_space<vmem>>, vector<8x128xbf16>
    tpu.vector_store %arg5[%c0_9, %c0_10], %11 {strides = array<i32>} : memref<8x128xbf16, #tpu.memory_space<vmem>>, vector<8x128xbf16>,
    return
  }
  func.func @transform_0(%arg0: i32) -> (i32, i32) {
    %c0_i32 = arith.constant 0 : i32
    %c0_i32_0 = arith.constant 0 : i32
    return %arg0, %c0_i32 : i32, i32
  }
  func.func @transform_1(%arg0: i32) -> (i32, i32) {
    %c0_i32 = arith.constant 0 : i32
    %c0_i32_0 = arith.constant 0 : i32
    %c0_i32_1 = arith.constant 0 : i32
    return %c0_i32, %c0_i32_0 : i32, i32
  }
  func.func @transform_2(%arg0: i32) -> (i32, i32) {
    %c0_i32 = arith.constant 0 : i32
    %c0_i32_0 = arith.constant 0 : i32
    %c0_i32_1 = arith.constant 0 : i32
    return %c0_i32, %c0_i32_0 : i32, i32
  }
  func.func @transform_3(%arg0: i32) -> (i32, i32) {
    %c0_i32 = arith.constant 0 : i32
    %c0_i32_0 = arith.constant 0 : i32
    %c0_i32_1 = arith.constant 0 : i32
    return %c0_i32, %c0_i32_0 : i32, i32
  }
  func.func @transform_4(%arg0: i32) -> (i32, i32) {
    %c0_i32 = arith.constant 0 : i32
    %c0_i32_0 = arith.constant 0 : i32
    return %arg0, %c0_i32 : i32, i32
  }
}

module attributes {stable_mosaic.version = 11 : i64} {
  func.func @_encoder_kernel(%arg0: i32, %arg1: memref<8x32xbf16, #tpu.memory_space<vmem>>, %arg2: memref<32x128xbf16, #tpu.memory_space<vmem>>, %arg3: memref<128x16xbf16, #tpu.memory_space<vmem>>, %arg4: memref<128x8xbf16, #tpu.memory_space<vmem>>, %arg5: memref<128x128xbf16, #tpu.memory_space<vmem>>, %arg6: memref<1x128xf32, #tpu.memory_space<vmem>>, %arg7: memref<16x128xbf16, #tpu.memory_space<vmem>>, %arg8: memref<1x128xf32, #tpu.memory_space<vmem>>, %arg9: memref<8x128xbf16, #tpu.memory_space<vmem>>, %arg10: memref<1x128xf32, #tpu.memory_space<vmem>>, %arg11: memref<128x256xbf16, #tpu.memory_space<vmem>>, %arg12: memref<128x256xbf16, #tpu.memory_space<vmem>>, %arg13: memref<1x256xf32, #tpu.memory_space<vmem>>, %arg14: memref<8x128xf32, #tpu.memory_space<vmem>>, %arg15: memref<8x256xf32, #tpu.memory_space<vmem>>, %arg16: memref<8x128xbf16, #tpu.memory_space<vmem>>) attributes {dimension_semantics = [#tpu.dimension_semantics<parallel>], iteration_bounds = array<i64: 4>, scalar_prefetch = 0 : i64, scratch_operands = 0 : i64, tpu.core_type = #tpu.core_type<tc>, window_params = [{transform_indices = @transform_0, window_bounds = array<i64: 8, 32>}, {pipeline_mode = #tpu.pipeline_mode<synchronous>, transform_indices = @transform_1, window_bounds = array<i64: 32, 128>}, {pipeline_mode = #tpu.pipeline_mode<synchronous>, transform_indices = @transform_2, window_bounds = array<i64: 128, 16>}, {pipeline_mode = #tpu.pipeline_mode<synchronous>, transform_indices = @transform_3, window_bounds = array<i64: 128, 8>}, {pipeline_mode = #tpu.pipeline_mode<synchronous>, transform_indices = @transform_4, window_bounds = array<i64: 128, 128>}, {pipeline_mode = #tpu.pipeline_mode<synchronous>, transform_indices = @transform_5, window_bounds = array<i64: 1, 128>}, {pipeline_mode = #tpu.pipeline_mode<synchronous>, transform_indices = @transform_6, window_bounds = array<i64: 16, 128>}, {pipeline_mode = #tpu.pipeline_mode<synchronous>, transform_indices = @transform_7, window_bounds = array<i64: 1, 128>}, {pipeline_mode = #tpu.pipeline_mode<synchronous>, transform_indices = @transform_8, window_bounds = array<i64: 8, 128>}, {pipeline_mode = #tpu.pipeline_mode<synchronous>, transform_indices = @transform_9, window_bounds = array<i64: 1, 128>}, {pipeline_mode = #tpu.pipeline_mode<synchronous>, transform_indices = @transform_10, window_bounds = array<i64: 128, 256>}, {pipeline_mode = #tpu.pipeline_mode<synchronous>, transform_indices = @transform_11, window_bounds = array<i64: 128, 256>}, {pipeline_mode = #tpu.pipeline_mode<synchronous>, transform_indices = @transform_12, window_bounds = array<i64: 1, 256>}, {transform_indices = @transform_13, window_bounds = array<i64: 8, 128>}, {transform_indices = @transform_14, window_bounds = array<i64: 8, 256>}, {transform_indices = @transform_15, window_bounds = array<i64: 8, 128>}]} {
    %c0 = arith.constant 0 : index
    %c0_0 = arith.constant 0 : index
    %0 = vector.load %arg1[%c0, %c0_0] : memref<8x32xbf16, #tpu.memory_space<vmem>>, vector<8x32xbf16>
    %c0_1 = arith.constant 0 : index
    %c0_2 = arith.constant 0 : index
    %1 = vector.load %arg2[%c0_1, %c0_2] : memref<32x128xbf16, #tpu.memory_space<vmem>>, vector<32x128xbf16>
    %cst = arith.constant dense<0.000000e+00> : vector<8x128xf32>
    %2 = tpu.matmul %0, %1, %cst {dimension_numbers = #tpu.dot_dimension_numbers<[1], [0], [0], [1], [0, 0, 1, 1], [], []>} : vector<8x32xbf16>, vector<32x128xbf16>, vector<8x128xf32> -> vector<8x128xf32>
    %3 = arith.truncf %2 : vector<8x128xf32> to vector<8x128xbf16>
    %c0_3 = arith.constant 0 : index
    %c0_4 = arith.constant 0 : index
    %4 = vector.load %arg5[%c0_3, %c0_4] : memref<128x128xbf16, #tpu.memory_space<vmem>>, vector<128x128xbf16>
    %cst_5 = arith.constant dense<0.000000e+00> : vector<8x128xf32>
    %5 = tpu.matmul %3, %4, %cst_5 {dimension_numbers = #tpu.dot_dimension_numbers<[1], [0], [0], [1], [0, 0, 1, 1], [], []>} : vector<8x128xbf16>, vector<128x128xbf16>, vector<8x128xf32> -> vector<8x128xf32>
    %c0_6 = arith.constant 0 : index
    %c0_7 = arith.constant 0 : index
    %6 = vector.load %arg6[%c0_6, %c0_7] : memref<1x128xf32, #tpu.memory_space<vmem>>, vector<1x128xf32>
    %7 = vector.broadcast %6 : vector<1x128xf32> to vector<8x128xf32>
    %8 = arith.addf %5, %7 : vector<8x128xf32>
    %cst_8 = arith.constant 0.000000e+00 : f32
    %9 = vector.broadcast %cst_8 : f32 to vector<8x128xf32>
    %10 = arith.maximumf %8, %9 : vector<8x128xf32>
    %c0_9 = arith.constant 0 : index
    %c0_10 = arith.constant 0 : index
    %11 = vector.load %arg3[%c0_9, %c0_10] : memref<128x16xbf16, #tpu.memory_space<vmem>>, vector<128x16xbf16>
    %c0_11 = arith.constant 0 : index
    %c0_12 = arith.constant 0 : index
    %12 = vector.load %arg7[%c0_11, %c0_12] : memref<16x128xbf16, #tpu.memory_space<vmem>>, vector<16x128xbf16>
    %cst_13 = arith.constant dense<0.000000e+00> : vector<128x128xf32>
    %13 = tpu.matmul %11, %12, %cst_13 {dimension_numbers = #tpu.dot_dimension_numbers<[1], [0], [0], [1], [0, 0, 1, 1], [], []>} : vector<128x16xbf16>, vector<16x128xbf16>, vector<128x128xf32> -> vector<128x128xf32>
    %c0_14 = arith.constant 0 : index
    %c0_15 = arith.constant 0 : index
    %14 = vector.load %arg8[%c0_14, %c0_15] : memref<1x128xf32, #tpu.memory_space<vmem>>, vector<1x128xf32>
    %15 = vector.broadcast %14 : vector<1x128xf32> to vector<128x128xf32>
    %16 = arith.addf %13, %15 : vector<128x128xf32>
    %cst_16 = arith.constant 0.000000e+00 : f32
    %17 = vector.broadcast %cst_16 : f32 to vector<128x128xf32>
    %18 = arith.maximumf %16, %17 : vector<128x128xf32>
    %c0_17 = arith.constant 0 : index
    %c0_18 = arith.constant 0 : index
    %19 = vector.load %arg4[%c0_17, %c0_18] : memref<128x8xbf16, #tpu.memory_space<vmem>>, vector<128x8xbf16>
    %c0_19 = arith.constant 0 : index
    %c0_20 = arith.constant 0 : index
    %20 = vector.load %arg9[%c0_19, %c0_20] : memref<8x128xbf16, #tpu.memory_space<vmem>>, vector<8x128xbf16>
    %cst_21 = arith.constant dense<0.000000e+00> : vector<128x128xf32>
    %21 = tpu.matmul %19, %20, %cst_21 {dimension_numbers = #tpu.dot_dimension_numbers<[1], [0], [0], [1], [0, 0, 1, 1], [], []>} : vector<128x8xbf16>, vector<8x128xbf16>, vector<128x128xf32> -> vector<128x128xf32>
    %c0_22 = arith.constant 0 : index
    %c0_23 = arith.constant 0 : index
    %22 = vector.load %arg10[%c0_22, %c0_23] : memref<1x128xf32, #tpu.memory_space<vmem>>, vector<1x128xf32>
    %23 = vector.broadcast %22 : vector<1x128xf32> to vector<128x128xf32>
    %24 = arith.addf %21, %23 : vector<128x128xf32>
    %cst_24 = arith.constant 0.000000e+00 : f32
    %25 = vector.broadcast %cst_24 : f32 to vector<128x128xf32>
    %26 = arith.maximumf %24, %25 : vector<128x128xf32>
    %27 = arith.truncf %10 : vector<8x128xf32> to vector<8x128xbf16>
    %c0_25 = arith.constant 0 : index
    %c0_26 = arith.constant 0 : index
    %28 = vector.load %arg11[%c0_25, %c0_26] : memref<128x256xbf16, #tpu.memory_space<vmem>>, vector<128x256xbf16>
    %cst_27 = arith.constant dense<0.000000e+00> : vector<8x256xf32>
    %29 = tpu.matmul %27, %28, %cst_27 {dimension_numbers = #tpu.dot_dimension_numbers<[1], [0], [0], [1], [0, 0, 1, 1], [], []>} : vector<8x128xbf16>, vector<128x256xbf16>, vector<8x256xf32> -> vector<8x256xf32>
    %30 = vector.extract_strided_slice %29 {offsets = [0, 0], sizes = [8, 128], strides = [1, 1]} : vector<8x256xf32> to vector<8x128xf32>
    %31 = arith.truncf %18 : vector<128x128xf32> to vector<128x128xbf16>
    %32 = arith.truncf %30 : vector<8x128xf32> to vector<8x128xbf16>
    %cst_28 = arith.constant dense<0.000000e+00> : vector<8x128xf32>
    %33 = tpu.matmul %32, %31, %cst_28 {dimension_numbers = #tpu.dot_dimension_numbers<[1], [1], [0], [0], [0, 0, 1, 0], [], []>} : vector<8x128xbf16>, vector<128x128xbf16>, vector<8x128xf32> -> vector<8x128xf32>
    %34 = tpu.iota {dimensions = array<i32: 1>} : vector<8x128xi32>
    %c10_i32 = arith.constant 10 : i32
    %35 = vector.broadcast %c10_i32 : i32 to vector<8x128xi32>
    %36 = arith.cmpi slt, %34, %35 : vector<8x128xi32>
    %cst_29 = arith.constant -1.000000e+30 : f32
    %37 = vector.broadcast %cst_29 : f32 to vector<8x128xf32>
    %38 = arith.select %36, %33, %37 : vector<8x128xi1>, vector<8x128xf32>
    %cst_30 = arith.constant dense<0xFF800000> : vector<8xf32>
    %39 = vector.multi_reduction <maximumf>, %38, %cst_30 [1] : vector<8x128xf32> to vector<8xf32>
    %40 = vector.shape_cast %39 : vector<8xf32> to vector<8x1xf32>
    %41 = vector.broadcast %40 : vector<8x1xf32> to vector<8x128xf32>
    %42 = arith.subf %38, %41 : vector<8x128xf32>
    %43 = math.exp %42 : vector<8x128xf32>
    %cst_31 = arith.constant dense<0.000000e+00> : vector<8xf32>
    %44 = vector.multi_reduction <add>, %43, %cst_31 [1] : vector<8x128xf32> to vector<8xf32>
    %45 = vector.shape_cast %44 : vector<8xf32> to vector<8x1xf32>
    %46 = tpu.reciprocal %45 : vector<8x1xf32> -> vector<8x1xf32>
    %47 = vector.broadcast %46 : vector<8x1xf32> to vector<8x128xf32>
    %48 = arith.mulf %43, %47 : vector<8x128xf32>
    %49 = arith.truncf %48 : vector<8x128xf32> to vector<8x128xbf16>
    %cst_32 = arith.constant dense<0.000000e+00> : vector<8x128xf32>
    %50 = tpu.matmul %49, %31, %cst_32 {dimension_numbers = #tpu.dot_dimension_numbers<[1], [0], [0], [1], [0, 0, 1, 1], [], []>} : vector<8x128xbf16>, vector<128x128xbf16>, vector<8x128xf32> -> vector<8x128xf32>
    %51 = vector.extract_strided_slice %29 {offsets = [0, 128], sizes = [8, 128], strides = [1, 1]} : vector<8x256xf32> to vector<8x128xf32>
    %52 = arith.truncf %26 : vector<128x128xf32> to vector<128x128xbf16>
    %53 = arith.truncf %51 : vector<8x128xf32> to vector<8x128xbf16>
    %cst_33 = arith.constant dense<0.000000e+00> : vector<8x128xf32>
    %54 = tpu.matmul %53, %52, %cst_33 {dimension_numbers = #tpu.dot_dimension_numbers<[1], [1], [0], [0], [0, 0, 1, 0], [], []>} : vector<8x128xbf16>, vector<128x128xbf16>, vector<8x128xf32> -> vector<8x128xf32>
    %55 = tpu.iota {dimensions = array<i32: 1>} : vector<8x128xi32>
    %c6_i32 = arith.constant 6 : i32
    %56 = vector.broadcast %c6_i32 : i32 to vector<8x128xi32>
    %57 = arith.cmpi slt, %55, %56 : vector<8x128xi32>
    %cst_34 = arith.constant -1.000000e+30 : f32
    %58 = vector.broadcast %cst_34 : f32 to vector<8x128xf32>
    %59 = arith.select %57, %54, %58 : vector<8x128xi1>, vector<8x128xf32>
    %cst_35 = arith.constant dense<0xFF800000> : vector<8xf32>
    %60 = vector.multi_reduction <maximumf>, %59, %cst_35 [1] : vector<8x128xf32> to vector<8xf32>
    %61 = vector.shape_cast %60 : vector<8xf32> to vector<8x1xf32>
    %62 = vector.broadcast %61 : vector<8x1xf32> to vector<8x128xf32>
    %63 = arith.subf %59, %62 : vector<8x128xf32>
    %64 = math.exp %63 : vector<8x128xf32>
    %cst_36 = arith.constant dense<0.000000e+00> : vector<8xf32>
    %65 = vector.multi_reduction <add>, %64, %cst_36 [1] : vector<8x128xf32> to vector<8xf32>
    %66 = vector.shape_cast %65 : vector<8xf32> to vector<8x1xf32>
    %67 = tpu.reciprocal %66 : vector<8x1xf32> -> vector<8x1xf32>
    %68 = vector.broadcast %67 : vector<8x1xf32> to vector<8x128xf32>
    %69 = arith.mulf %64, %68 : vector<8x128xf32>
    %70 = arith.truncf %69 : vector<8x128xf32> to vector<8x128xbf16>
    %cst_37 = arith.constant dense<0.000000e+00> : vector<8x128xf32>
    %71 = tpu.matmul %70, %52, %cst_37 {dimension_numbers = #tpu.dot_dimension_numbers<[1], [0], [0], [1], [0, 0, 1, 1], [], []>} : vector<8x128xbf16>, vector<128x128xbf16>, vector<8x128xf32> -> vector<8x128xf32>
    %72 = arith.addf %50, %71 : vector<8x128xf32>
    %73 = arith.truncf %72 : vector<8x128xf32> to vector<8x128xbf16>
    %c0_38 = arith.constant 0 : index
    %c0_39 = arith.constant 0 : index
    %74 = vector.load %arg12[%c0_38, %c0_39] : memref<128x256xbf16, #tpu.memory_space<vmem>>, vector<128x256xbf16>
    %cst_40 = arith.constant dense<0.000000e+00> : vector<8x256xf32>
    %75 = tpu.matmul %73, %74, %cst_40 {dimension_numbers = #tpu.dot_dimension_numbers<[1], [0], [0], [1], [0, 0, 1, 1], [], []>} : vector<8x128xbf16>, vector<128x256xbf16>, vector<8x256xf32> -> vector<8x256xf32>
    %c0_41 = arith.constant 0 : index
    %c0_42 = arith.constant 0 : index
    %76 = vector.load %arg13[%c0_41, %c0_42] : memref<1x256xf32, #tpu.memory_space<vmem>>, vector<1x256xf32>
    %77 = vector.broadcast %76 : vector<1x256xf32> to vector<8x256xf32>
    %78 = arith.addf %75, %77 : vector<8x256xf32>
    %c0_43 = arith.constant 0 : index
    %c0_44 = arith.constant 0 : index
    %79 = vector.load %arg15[%c0_43, %c0_44] : memref<8x256xf32, #tpu.memory_space<vmem>>, vector<8x256xf32>
    tpu.vector_store %arg15[%c0_43, %c0_44], %78 {strides = array<i32>} : memref<8x256xf32, #tpu.memory_space<vmem>>, vector<8x256xf32>,
    %80 = vector.extract_strided_slice %78 {offsets = [0, 0], sizes = [8, 128], strides = [1, 1]} : vector<8x256xf32> to vector<8x128xf32>
    %c0_45 = arith.constant 0 : index
    %c0_46 = arith.constant 0 : index
    %81 = vector.load %arg14[%c0_45, %c0_46] : memref<8x128xf32, #tpu.memory_space<vmem>>, vector<8x128xf32>
    %82 = vector.extract_strided_slice %78 {offsets = [0, 128], sizes = [8, 128], strides = [1, 1]} : vector<8x256xf32> to vector<8x128xf32>
    %cst_47 = arith.constant 5.000000e-01 : f32
    %83 = vector.broadcast %cst_47 : f32 to vector<8x128xf32>
    %84 = arith.mulf %83, %82 : vector<8x128xf32>
    %85 = math.exp %84 : vector<8x128xf32>
    %86 = arith.mulf %81, %85 : vector<8x128xf32>
    %87 = arith.addf %80, %86 : vector<8x128xf32>
    %88 = arith.truncf %87 : vector<8x128xf32> to vector<8x128xbf16>
    %c0_48 = arith.constant 0 : index
    %c0_49 = arith.constant 0 : index
    %89 = vector.load %arg16[%c0_48, %c0_49] : memref<8x128xbf16, #tpu.memory_space<vmem>>, vector<8x128xbf16>
    tpu.vector_store %arg16[%c0_48, %c0_49], %88 {strides = array<i32>} : memref<8x128xbf16, #tpu.memory_space<vmem>>, vector<8x128xbf16>,
    return
  }
  func.func @transform_0(%arg0: i32) -> (i32, i32) {
    %c0_i32 = arith.constant 0 : i32
    %c0_i32_0 = arith.constant 0 : i32
    return %arg0, %c0_i32 : i32, i32
  }
  func.func @transform_1(%arg0: i32) -> (i32, i32) {
    %c0_i32 = arith.constant 0 : i32
    %c0_i32_0 = arith.constant 0 : i32
    %c0_i32_1 = arith.constant 0 : i32
    return %c0_i32, %c0_i32_0 : i32, i32
  }
  func.func @transform_2(%arg0: i32) -> (i32, i32) {
    %c0_i32 = arith.constant 0 : i32
    %c0_i32_0 = arith.constant 0 : i32
    %c0_i32_1 = arith.constant 0 : i32
    return %c0_i32, %c0_i32_0 : i32, i32
  }
  func.func @transform_3(%arg0: i32) -> (i32, i32) {
    %c0_i32 = arith.constant 0 : i32
    %c0_i32_0 = arith.constant 0 : i32
    %c0_i32_1 = arith.constant 0 : i32
    return %c0_i32, %c0_i32_0 : i32, i32
  }
  func.func @transform_4(%arg0: i32) -> (i32, i32) {
    %c0_i32 = arith.constant 0 : i32
    %c0_i32_0 = arith.constant 0 : i32
    %c0_i32_1 = arith.constant 0 : i32
    return %c0_i32, %c0_i32_0 : i32, i32
  }
  func.func @transform_5(%arg0: i32) -> (i32, i32) {
    %c0_i32 = arith.constant 0 : i32
    %c0_i32_0 = arith.constant 0 : i32
    %c0_i32_1 = arith.constant 0 : i32
    return %c0_i32, %c0_i32_0 : i32, i32
  }
  func.func @transform_6(%arg0: i32) -> (i32, i32) {
    %c0_i32 = arith.constant 0 : i32
    %c0_i32_0 = arith.constant 0 : i32
    %c0_i32_1 = arith.constant 0 : i32
    return %c0_i32, %c0_i32_0 : i32, i32
  }
  func.func @transform_7(%arg0: i32) -> (i32, i32) {
    %c0_i32 = arith.constant 0 : i32
    %c0_i32_0 = arith.constant 0 : i32
    %c0_i32_1 = arith.constant 0 : i32
    return %c0_i32, %c0_i32_0 : i32, i32
  }
  func.func @transform_8(%arg0: i32) -> (i32, i32) {
    %c0_i32 = arith.constant 0 : i32
    %c0_i32_0 = arith.constant 0 : i32
    %c0_i32_1 = arith.constant 0 : i32
    return %c0_i32, %c0_i32_0 : i32, i32
  }
  func.func @transform_9(%arg0: i32) -> (i32, i32) {
    %c0_i32 = arith.constant 0 : i32
    %c0_i32_0 = arith.constant 0 : i32
    %c0_i32_1 = arith.constant 0 : i32
    return %c0_i32, %c0_i32_0 : i32, i32
  }
  func.func @transform_10(%arg0: i32) -> (i32, i32) {
    %c0_i32 = arith.constant 0 : i32
    %c0_i32_0 = arith.constant 0 : i32
    %c0_i32_1 = arith.constant 0 : i32
    return %c0_i32, %c0_i32_0 : i32, i32
  }
  func.func @transform_11(%arg0: i32) -> (i32, i32) {
    %c0_i32 = arith.constant 0 : i32
    %c0_i32_0 = arith.constant 0 : i32
    %c0_i32_1 = arith.constant 0 : i32
    return %c0_i32, %c0_i32_0 : i32, i32
  }
  func.func @transform_12(%arg0: i32) -> (i32, i32) {
    %c0_i32 = arith.constant 0 : i32
    %c0_i32_0 = arith.constant 0 : i32
    %c0_i32_1 = arith.constant 0 : i32
    return %c0_i32, %c0_i32_0 : i32, i32
  }
  func.func @transform_13(%arg0: i32) -> (i32, i32) {
    %c0_i32 = arith.constant 0 : i32
    %c0_i32_0 = arith.constant 0 : i32
    return %arg0, %c0_i32 : i32, i32
  }
  func.func @transform_14(%arg0: i32) -> (i32, i32) {
    %c0_i32 = arith.constant 0 : i32
    %c0_i32_0 = arith.constant 0 : i32
    return %arg0, %c0_i32 : i32, i32
  }
  func.func @transform_15(%arg0: i32) -> (i32, i32) {
    %c0_i32 = arith.constant 0 : i32
    %c0_i32_0 = arith.constant 0 : i32
    return %arg0, %c0_i32 : i32, i32
  }
}

module attributes {stable_mosaic.version = 11 : i64} {
  func.func @_gcn_kernel(%arg0: i32, %arg1: memref<8x32xbf16, #tpu.memory_space<vmem>>, %arg2: memref<32x128xbf16, #tpu.memory_space<vmem>>, %arg3: memref<128x128xbf16, #tpu.memory_space<vmem>>, %arg4: memref<1x128xf32, #tpu.memory_space<vmem>>, %arg5: memref<8x128xf32, #tpu.memory_space<vmem>>) attributes {dimension_semantics = [#tpu.dimension_semantics<parallel>], iteration_bounds = array<i64: 4>, scalar_prefetch = 0 : i64, scratch_operands = 0 : i64, tpu.core_type = #tpu.core_type<tc>, window_params = [{transform_indices = @transform_0, window_bounds = array<i64: 8, 32>}, {pipeline_mode = #tpu.pipeline_mode<synchronous>, transform_indices = @transform_1, window_bounds = array<i64: 32, 128>}, {pipeline_mode = #tpu.pipeline_mode<synchronous>, transform_indices = @transform_2, window_bounds = array<i64: 128, 128>}, {pipeline_mode = #tpu.pipeline_mode<synchronous>, transform_indices = @transform_3, window_bounds = array<i64: 1, 128>}, {transform_indices = @transform_4, window_bounds = array<i64: 8, 128>}]} {
    %c0 = arith.constant 0 : index
    %c0_0 = arith.constant 0 : index
    %0 = vector.load %arg1[%c0, %c0_0] : memref<8x32xbf16, #tpu.memory_space<vmem>>, vector<8x32xbf16>
    %c0_1 = arith.constant 0 : index
    %c0_2 = arith.constant 0 : index
    %1 = vector.load %arg2[%c0_1, %c0_2] : memref<32x128xbf16, #tpu.memory_space<vmem>>, vector<32x128xbf16>
    %cst = arith.constant dense<0.000000e+00> : vector<8x128xf32>
    %2 = tpu.matmul %0, %1, %cst {dimension_numbers = #tpu.dot_dimension_numbers<[1], [0], [0], [1], [0, 0, 1, 1], [], []>} : vector<8x32xbf16>, vector<32x128xbf16>, vector<8x128xf32> -> vector<8x128xf32>
    %3 = arith.truncf %2 : vector<8x128xf32> to vector<8x128xbf16>
    %c0_3 = arith.constant 0 : index
    %c0_4 = arith.constant 0 : index
    %4 = vector.load %arg3[%c0_3, %c0_4] : memref<128x128xbf16, #tpu.memory_space<vmem>>, vector<128x128xbf16>
    %cst_5 = arith.constant dense<0.000000e+00> : vector<8x128xf32>
    %5 = tpu.matmul %3, %4, %cst_5 {dimension_numbers = #tpu.dot_dimension_numbers<[1], [0], [0], [1], [0, 0, 1, 1], [], []>} : vector<8x128xbf16>, vector<128x128xbf16>, vector<8x128xf32> -> vector<8x128xf32>
    %c0_6 = arith.constant 0 : index
    %c0_7 = arith.constant 0 : index
    %6 = vector.load %arg4[%c0_6, %c0_7] : memref<1x128xf32, #tpu.memory_space<vmem>>, vector<1x128xf32>
    %7 = vector.broadcast %6 : vector<1x128xf32> to vector<8x128xf32>
    %8 = arith.addf %5, %7 : vector<8x128xf32>
    %c0_8 = arith.constant 0 : index
    %c0_9 = arith.constant 0 : index
    %9 = vector.load %arg5[%c0_8, %c0_9] : memref<8x128xf32, #tpu.memory_space<vmem>>, vector<8x128xf32>
    tpu.vector_store %arg5[%c0_8, %c0_9], %8 {strides = array<i32>} : memref<8x128xf32, #tpu.memory_space<vmem>>, vector<8x128xf32>,
    return
  }
  func.func @transform_0(%arg0: i32) -> (i32, i32) {
    %c0_i32 = arith.constant 0 : i32
    %c0_i32_0 = arith.constant 0 : i32
    return %arg0, %c0_i32 : i32, i32
  }
  func.func @transform_1(%arg0: i32) -> (i32, i32) {
    %c0_i32 = arith.constant 0 : i32
    %c0_i32_0 = arith.constant 0 : i32
    %c0_i32_1 = arith.constant 0 : i32
    return %c0_i32, %c0_i32_0 : i32, i32
  }
  func.func @transform_2(%arg0: i32) -> (i32, i32) {
    %c0_i32 = arith.constant 0 : i32
    %c0_i32_0 = arith.constant 0 : i32
    %c0_i32_1 = arith.constant 0 : i32
    return %c0_i32, %c0_i32_0 : i32, i32
  }
  func.func @transform_3(%arg0: i32) -> (i32, i32) {
    %c0_i32 = arith.constant 0 : i32
    %c0_i32_0 = arith.constant 0 : i32
    %c0_i32_1 = arith.constant 0 : i32
    return %c0_i32, %c0_i32_0 : i32, i32
  }
  func.func @transform_4(%arg0: i32) -> (i32, i32) {
    %c0_i32 = arith.constant 0 : i32
    %c0_i32_0 = arith.constant 0 : i32
    return %arg0, %c0_i32 : i32, i32
  }
}

</mosaic_0001>

<bundles_post_ra>
// kernel: vgae_att_forward.4
= control target key start
LH: loop header
LB: loop body
LE: loop exit
PB: predicated region body
PF: predicated region fallthrough
CT: control target
= control target key end

     0   :  { %s539_s15 = smov 0   ;;  %s596_s0 = inlined_call_operand.vmem [shape: bf16[32,32], index: 0, kind: input, shape index: {}]   ;;  %s597_s1 = inlined_call_operand.vmem [shape: bf16[32,128], index: 1, kind: input, shape index: {}]   ;;  %s598_s2 = inlined_call_operand.vmem [shape: bf16[128,128], index: 2, kind: input, shape index: {}]   ;;  %s599_s3 = inlined_call_operand.vmem [shape: f32[1,128], index: 3, kind: input, shape index: {}]   ;;  %s600_s4 = inlined_call_operand.vmem [shape: bf16[32,128], index: 4, kind: output, shape index: {}]  }
   0x1 LB: > { %s423_s16 = sadd.s32 4294967295, %s510_s15   ;;  %p427_p0 = scmp.ge.s32.totalorder %s510_s15, 1  ;;  %s510_s15 = sphi %s539_s15, %s14_s15  }
   0x2   : > { %p161_p1 = scmp.lt.s32.totalorder %s510_s15, 5 }
   0x4   : > { %p162_p2 = pnand %p427_p0, %p161_p1 }
   0x5   : > { %v494_v0 = vld [vmem:[%s597_s1] sm:$0xff] (!%p162_p2)   ;;  %v512_v1 = vmov (!%p162_p2), 0.0   ;;  %v495_v2 = vld [vmem:[%s597_s1 + $0x8] sm:$0xff] (!%p162_p2)   ;;  %vm513_vm0 = vmmov (!%p162_p2), 0   ;;  %p185_p3 = scmp.lt.s32.totalorder (!%p162_p2), %s423_s16, 3  ;;  %vm211_vm1 = vcmask (!%p162_p2), 261120  }
   0x6   : > { %165 = sbr.rel (%p162_p2) target bundleno = 450 (0x1c2), region = 36  ;;  %456 = vmatprep.subr.bf16.mxu0 (!%p162_p2), %v512_v1  ;;  %464 = vmatprep.subr.bf16.mxu1 (!%p162_p2), %v512_v1  ;;  %v496_v3 = vld [vmem:[%s598_s2] sm:$0xff] (!%p162_p2)   ;;  %v497_v4 = vld [vmem:[%s598_s2 + $0x8] sm:$0xff] (!%p162_p2)   ;;  %v498_v6 = vld [vmem:[%s598_s2 + $0x10] sm:$0xff] (!%p162_p2)  }
   0x7   : > { %457 = vmatpush3.bf16.msra.mxu0 (!%p162_p2), %v494_v0  ;;  %460 = vmatprep.mubr.msk.bf16.mxu0 (!%p162_p2), %vm513_vm0, %v512_v1  ;;  %v499_v7 = vld [vmem:[%s598_s2 + $0x18] sm:$0xff] (!%p162_p2)   ;;  %v500_v8 = vld [vmem:[%s598_s2 + $0x20] sm:$0xff] (!%p162_p2)   ;;  %v501_v9 = vld [vmem:[%s598_s2 + $0x28] sm:$0xff] (!%p162_p2)  }
   0x8   : > { %458 = vmatprep.subr.bf16.mxu0 (!%p162_p2), %v512_v1  ;;  %480 = vmatprep.mubr.msk.bf16.mxu1 (!%p162_p2), %vm513_vm0, %v512_v1  ;;  %v502_v10 = vld [vmem:[%s598_s2 + $0x30] sm:$0xff] (!%p162_p2)   ;;  %v503_v11 = vld [vmem:[%s598_s2 + $0x38] sm:$0xff] (!%p162_p2)   ;;  %v433_v17 = vld [vmem:[%s599_s3] ss:$0 sm:$0xff] (!%p162_p2) }
   0x9   : > { %465 = vmatpush3.bf16.msra.mxu1 (!%p162_p2), %v496_v3 }
   0xa   : > { %466 = vmatprep.subr.bf16.mxu1 (!%p162_p2), %v512_v1 }
   0xb   : > { %459 = vmatpush3.bf16.msra.mxu0 (!%p162_p2), %v495_v2 }
   0xd   : > { %s602_s16 = smov (!%p185_p3, %s423_s16), 3  ;;  %467 = vmatpush3.bf16.msra.mxu1 %v497_v4 }
   0xe   : > { %s428_s25 = sshll.u32 %s602_s16, 2  ;;  %468 = vmatprep.subr.bf16.mxu1 %v512_v1 }
   0xf   : > { %s188_s28 = scalar_lea.vmem %s596_s0, %s428_s25  ;;  %s192_s21 = scalar_lea.vmem %s600_s4, %s428_s25 }
  0x10   : > { %v194_v5 = vld [vmem:[%s188_s28] sm:$0xf] }
  0x11   : > { %461 = vmatmul.mubr.msk.bf16.vlgmr.msra.gmra.mrb[0].mxu0 %vm211_vm1, %v194_v5  ;;  %469 = vmatpush3.bf16.msra.mxu1 %v498_v6 }
  0x12   : > { %470 = vmatprep.subr.bf16.mxu1 %v512_v1 }
  0x15   : > { %471 = vmatpush3.bf16.msra.mxu1 %v499_v7 }
  0x16   : > { %472 = vmatprep.subr.bf16.mxu1 %v512_v1 }
  0x19   : > { %473 = vmatpush3.bf16.msra.mxu1 %v500_v8 }
  0x1a   : > { %474 = vmatprep.subr.bf16.mxu1 %v512_v1 }
  0x1d   : > { %475 = vmatpush3.bf16.msra.mxu1 %v501_v9 }
  0x1e   : > { %476 = vmatprep.subr.bf16.mxu1 %v512_v1 }
  0x21   : > { %477 = vmatpush3.bf16.msra.mxu1 %v502_v10 }
  0x22   : > { %478 = vmatprep.subr.bf16.mxu1 %v512_v1 }
  0x25   : > { %479 = vmatpush3.bf16.msra.mxu1 %v503_v11 }
  0xe4   : > { %v249_v12 = vpop.f32.mrb[0].mxu0 }
  0xe5   : > { %v255_v13 = vpack.c.bf16 %v249_v12, %v249_v12  ;;  %v462_v14 = vpop.f32.mrb[1].mxu0 }
  0xe6   : > { %v252_v15 = vpop.f32.mrb[2].mxu0 }
  0xe7   : > { %v463_v16 = vpop.f32.mrb[3].mxu0  ;;  %481 = vmatmul.mubr.bf16.vlgmr.msra.gmra.mrb[0].mxu1 %v255_v13 }
 0x1ba   : > { %v361_v18 = vpop.f32.mrb[0].mxu1 }
 0x1bb   : > { %v362_v19 = vadd.f32 %v433_v17, %v361_v18  ;;  %v482_v20 = vpop.f32.mrb[1].mxu1 }
 0x1bc   : > { %v364_v21 = vpop.f32.mrb[2].mxu1 }
 0x1bd   : > { %v367_v22 = vmax.f32 %v362_v19, 0.0  ;;  %v483_v23 = vpop.f32.mrb[3].mxu1 }
 0x1bf   : > { %v368_v24 = vpack.c.bf16 %v367_v22, %v367_v22 }
 0x1c1   : > { %369 = vst [vmem:[%s192_s21] sm:$0xf] %v368_v24 }
 0x1c2 PF: > { %s14_s15 = sadd.s32 1, %s510_s15  }
 0x1c3   : > { %p11_p4 = scmp.ge.s32.totalorder %s14_s15, 6  }
 0x1c5   :  { %13 = sbr.rel (!%p11_p4) target bundleno = 1 (0x1), region = 66 }

// kernel: vgae_att_forward.5
= control target key start
LH: loop header
LB: loop body
LE: loop exit
PB: predicated region body
PF: predicated region fallthrough
CT: control target
= control target key end

     0   :  { %s537_s15 = smov 0   ;;  %s591_s0 = inlined_call_operand.vmem [shape: bf16[32,32], index: 0, kind: input, shape index: {}]   ;;  %s592_s1 = inlined_call_operand.vmem [shape: bf16[32,128], index: 1, kind: input, shape index: {}]   ;;  %s593_s2 = inlined_call_operand.vmem [shape: bf16[128,128], index: 2, kind: input, shape index: {}]   ;;  %s594_s3 = inlined_call_operand.vmem [shape: f32[1,128], index: 3, kind: input, shape index: {}]   ;;  %s595_s4 = inlined_call_operand.vmem [shape: f32[32,128], index: 4, kind: output, shape index: {}]  }
   0x1 LB: > { %s421_s16 = sadd.s32 4294967295, %s508_s15   ;;  %p425_p0 = scmp.ge.s32.totalorder %s508_s15, 1  ;;  %s508_s15 = sphi %s537_s15, %s14_s15  }
   0x2   : > { %p161_p1 = scmp.lt.s32.totalorder %s508_s15, 5 }
   0x4   : > { %p162_p2 = pnand %p425_p0, %p161_p1 }
   0x5   : > { %v492_v0 = vld [vmem:[%s592_s1] sm:$0xff] (!%p162_p2)   ;;  %v510_v1 = vmov (!%p162_p2), 0.0   ;;  %v493_v2 = vld [vmem:[%s592_s1 + $0x8] sm:$0xff] (!%p162_p2)   ;;  %vm511_vm0 = vmmov (!%p162_p2), 0   ;;  %p185_p3 = scmp.lt.s32.totalorder (!%p162_p2), %s421_s16, 3  ;;  %vm211_vm1 = vcmask (!%p162_p2), 261120  }
   0x6   : > { %165 = sbr.rel (%p162_p2) target bundleno = 446 (0x1be), region = 36  ;;  %454 = vmatprep.subr.bf16.mxu0 (!%p162_p2), %v510_v1  ;;  %462 = vmatprep.subr.bf16.mxu1 (!%p162_p2), %v510_v1  ;;  %v494_v3 = vld [vmem:[%s593_s2] sm:$0xff] (!%p162_p2)   ;;  %v495_v4 = vld [vmem:[%s593_s2 + $0x8] sm:$0xff] (!%p162_p2)   ;;  %v496_v6 = vld [vmem:[%s593_s2 + $0x10] sm:$0xff] (!%p162_p2)  }
   0x7   : > { %455 = vmatpush3.bf16.msra.mxu0 (!%p162_p2), %v492_v0  ;;  %458 = vmatprep.mubr.msk.bf16.mxu0 (!%p162_p2), %vm511_vm0, %v510_v1  ;;  %v497_v7 = vld [vmem:[%s593_s2 + $0x18] sm:$0xff] (!%p162_p2)   ;;  %v498_v8 = vld [vmem:[%s593_s2 + $0x20] sm:$0xff] (!%p162_p2)   ;;  %v499_v9 = vld [vmem:[%s593_s2 + $0x28] sm:$0xff] (!%p162_p2)  }
   0x8   : > { %456 = vmatprep.subr.bf16.mxu0 (!%p162_p2), %v510_v1  ;;  %478 = vmatprep.mubr.msk.bf16.mxu1 (!%p162_p2), %vm511_vm0, %v510_v1  ;;  %v500_v10 = vld [vmem:[%s593_s2 + $0x30] sm:$0xff] (!%p162_p2)   ;;  %v501_v11 = vld [vmem:[%s593_s2 + $0x38] sm:$0xff] (!%p162_p2)   ;;  %v431_v17 = vld [vmem:[%s594_s3] ss:$0 sm:$0xff] (!%p162_p2) }
   0x9   : > { %463 = vmatpush3.bf16.msra.mxu1 (!%p162_p2), %v494_v3 }
   0xa   : > { %464 = vmatprep.subr.bf16.mxu1 (!%p162_p2), %v510_v1 }
   0xb   : > { %457 = vmatpush3.bf16.msra.mxu0 (!%p162_p2), %v493_v2 }
   0xd   : > { %s597_s16 = smov (!%p185_p3, %s421_s16), 3  ;;  %465 = vmatpush3.bf16.msra.mxu1 %v495_v4 }
   0xe   : > { %s426_s25 = sshll.u32 %s597_s16, 2  ;;  %466 = vmatprep.subr.bf16.mxu1 %v510_v1  ;;  %s427_s17 = sshll.u32 %s597_s16, 3 }
   0xf   : > { %s188_s28 = scalar_lea.vmem %s591_s0, %s426_s25  ;;  %s192_s22 = scalar_lea.vmem %s595_s4, %s427_s17 }
  0x10   : > { %v194_v5 = vld [vmem:[%s188_s28] sm:$0xf] }
  0x11   : > { %459 = vmatmul.mubr.msk.bf16.vlgmr.msra.gmra.mrb[0].mxu0 %vm211_vm1, %v194_v5  ;;  %467 = vmatpush3.bf16.msra.mxu1 %v496_v6 }
  0x12   : > { %468 = vmatprep.subr.bf16.mxu1 %v510_v1 }
  0x15   : > { %469 = vmatpush3.bf16.msra.mxu1 %v497_v7 }
  0x16   : > { %470 = vmatprep.subr.bf16.mxu1 %v510_v1 }
  0x19   : > { %471 = vmatpush3.bf16.msra.mxu1 %v498_v8 }
  0x1a   : > { %472 = vmatprep.subr.bf16.mxu1 %v510_v1 }
  0x1d   : > { %473 = vmatpush3.bf16.msra.mxu1 %v499_v9 }
  0x1e   : > { %474 = vmatprep.subr.bf16.mxu1 %v510_v1 }
  0x21   : > { %475 = vmatpush3.bf16.msra.mxu1 %v500_v10 }
  0x22   : > { %476 = vmatprep.subr.bf16.mxu1 %v510_v1 }
  0x25   : > { %477 = vmatpush3.bf16.msra.mxu1 %v501_v11 }
  0xe4   : > { %v249_v12 = vpop.f32.mrb[0].mxu0 }
  0xe5   : > { %v255_v13 = vpack.c.bf16 %v249_v12, %v249_v12  ;;  %v460_v14 = vpop.f32.mrb[1].mxu0 }
  0xe6   : > { %v252_v15 = vpop.f32.mrb[2].mxu0 }
  0xe7   : > { %v461_v16 = vpop.f32.mrb[3].mxu0  ;;  %479 = vmatmul.mubr.bf16.vlgmr.msra.gmra.mrb[0].mxu1 %v255_v13 }
 0x1ba   : > { %v361_v18 = vpop.f32.mrb[0].mxu1 }
 0x1bb   : > { %v362_v19 = vadd.f32 %v431_v17, %v361_v18  ;;  %v480_v20 = vpop.f32.mrb[1].mxu1 }
 0x1bc   : > { %v364_v21 = vpop.f32.mrb[2].mxu1 }
 0x1bd   : > { %367 = vst [vmem:[%s192_s22] sm:$0xff] %v362_v19  ;;  %v481_v22 = vpop.f32.mrb[3].mxu1 }
 0x1be PF: > { %s14_s15 = sadd.s32 1, %s508_s15  }
 0x1bf   : > { %p11_p4 = scmp.ge.s32.totalorder %s14_s15, 6  }
 0x1c1   :  { %13 = sbr.rel (!%p11_p4) target bundleno = 1 (0x1), region = 66 }

// kernel: vgae_att_forward.3
= control target key start
LH: loop header
LB: loop body
LE: loop exit
PB: predicated region body
PF: predicated region fallthrough
CT: control target
= control target key end

     0   :  { %s2204_s18 = smov 0   ;;  %s2560_s0 = inlined_call_operand.vmem [shape: bf16[32,32], index: 0, kind: input, shape index: {}]   ;;  %s2561_s1 = inlined_call_operand.vmem [shape: bf16[32,128], index: 1, kind: input, shape index: {}]   ;;  %s2562_s2 = inlined_call_operand.vmem [shape: bf16[128,16], index: 2, kind: input, shape index: {}]   ;;  %s2563_s3 = inlined_call_operand.vmem [shape: bf16[128,8], index: 3, kind: input, shape index: {}]   ;;  %s2564_s4 = inlined_call_operand.vmem [shape: bf16[128,128], index: 4, kind: input, shape index: {}]   ;;  %s2565_s5 = inlined_call_operand.vmem [shape: f32[1,128], index: 5, kind: input, shape index: {}]   ;;  %s2566_s6 = inlined_call_operand.vmem [shape: bf16[16,128], index: 6, kind: input, shape index: {}]   ;;  %s2567_s7 = inlined_call_operand.vmem [shape: f32[1,128], index: 7, kind: input, shape index: {}]   ;;  %s2568_s8 = inlined_call_operand.vmem [shape: bf16[8,128], index: 8, kind: input, shape index: {}]   ;;  %s2569_s9 = inlined_call_operand.vmem [shape: f32[1,128], index: 9, kind: input, shape index: {}]   ;;  %s2570_s10 = inlined_call_operand.vmem [shape: bf16[128,256], index: 10, kind: input, shape index: {}]   ;;  %s2571_s11 = inlined_call_operand.vmem [shape: bf16[128,256], index: 11, kind: input, shape index: {}]   ;;  %s2572_s12 = inlined_call_operand.vmem [shape: f32[1,256], index: 12, kind: input, shape index: {}]   ;;  %s2573_s13 = inlined_call_operand.vmem [shape: f32[32,128], index: 13, kind: input, shape index: {}]   ;;  %s2574_s14 = inlined_call_operand.vmem [shape: f32[32,256], index: 14, kind: output, shape index: {0}]   ;;  %s2575_s15 = inlined_call_operand.vmem [shape: bf16[32,128], index: 15, kind: output, shape index: {1}]  }
   0x1 LB: > { %s1710_s19 = sadd.s32 4294967295, %s2119_s18   ;;  %p1714_p0 = scmp.ge.s32.totalorder %s2119_s18, 1  ;;  %s2119_s18 = sphi %s2204_s18, %s26_s18  }
   0x2   : > { %p448_p1 = scmp.lt.s32.totalorder %s2119_s18, 5 }
   0x4   : > { %p449_p2 = pnand %p1714_p0, %p448_p1 }
   0x5   : > { %v2028_v0 = vld [vmem:[%s2561_s1] sm:$0xff] (!%p449_p2)   ;;  %v2121_v1 = vmov (!%p449_p2), 0.0   ;;  %v2029_v2 = vld [vmem:[%s2561_s1 + $0x8] sm:$0xff] (!%p449_p2)   ;;  %vm2122_vm0 = vmmov (!%p449_p2), 0   ;;  %p503_p3 = scmp.lt.s32.totalorder (!%p449_p2), %s1710_s19, 3  ;;  %vm538_vm1 = vcmask (!%p449_p2), 261120  }
   0x6   : > { %452 = sbr.rel (%p449_p2) target bundleno = 1674 (0x68a), region = 76  ;;  %1868 = vmatprep.subr.bf16.mxu0 (!%p449_p2), %v2121_v1  ;;  %1876 = vmatprep.subr.bf16.mxu1 (!%p449_p2), %v2121_v1  ;;  %v2030_v3 = vld [vmem:[%s2564_s4] sm:$0xff] (!%p449_p2)   ;;  %v2031_v4 = vld [vmem:[%s2564_s4 + $0x8] sm:$0xff] (!%p449_p2)   ;;  %v2032_v6 = vld [vmem:[%s2564_s4 + $0x10] sm:$0xff] (!%p449_p2)   ;;  %vm993_vm2 = vcmask (!%p449_p2), 1043456   ;;  %vm766_vm3 = vcmask (!%p449_p2), 130048  }
   0x7   : > { %1869 = vmatpush3.bf16.msra.mxu0 (!%p449_p2), %v2028_v0  ;;  %1872 = vmatprep.mubr.msk.bf16.mxu0 (!%p449_p2), %vm2122_vm0, %v2121_v1  ;;  %v2033_v7 = vld [vmem:[%s2564_s4 + $0x18] sm:$0xff] (!%p449_p2)   ;;  %v2034_v8 = vld [vmem:[%s2564_s4 + $0x20] sm:$0xff] (!%p449_p2)   ;;  %v2035_v9 = vld [vmem:[%s2564_s4 + $0x28] sm:$0xff] (!%p449_p2)   ;;  %vm968_vm4 = vcmask (!%p449_p2), 64512   ;;  %v2123_v52 = vmov (!%p449_p2), 0  }
   0x8   : > { %1870 = vmatprep.subr.bf16.mxu0 (!%p449_p2), %v2121_v1  ;;  %1892 = vmatprep.mubr.msk.bf16.mxu1 (!%p449_p2), %vm2122_vm0, %v2121_v1  ;;  %v2036_v10 = vld [vmem:[%s2564_s4 + $0x30] sm:$0xff] (!%p449_p2)   ;;  %v2037_v11 = vld [vmem:[%s2564_s4 + $0x38] sm:$0xff] (!%p449_p2)   ;;  %v920_v12 = vld [vmem:[%s2568_s8] sm:$0xf] (!%p449_p2) }
   0x9   : > { %1877 = vmatpush3.bf16.msra.mxu1 (!%p449_p2), %v2030_v3  ;;  %v995_v13 = vsel (!%p449_p2), %vm993_vm2, %v920_v12, 0  ;;  %v2040_v14 = vld [vmem:[%s2566_s6] sm:$0xff] (!%p449_p2)   ;;  %v2042_v16 = vld [vmem:[%s2562_s2 + $0x8] sm:$0xff] (!%p449_p2)   ;;  %v2045_v17 = vld [vmem:[%s2562_s2 + $0x10] sm:$0xff] (!%p449_p2)  }
   0xa   : > { %1878 = vmatprep.subr.bf16.mxu1 (!%p449_p2), %v2121_v1  ;;  %v2041_v15 = vld [vmem:[%s2562_s2] sm:$0xff] (!%p449_p2)   ;;  %v2046_v18 = vld [vmem:[%s2562_s2 + $0x18] sm:$0xff] (!%p449_p2)   ;;  %v2050_v22 = vld [vmem:[%s2562_s2 + $0x28] sm:$0xff] (!%p449_p2)  }
   0xb   : > { %1871 = vmatpush3.bf16.msra.mxu0 (!%p449_p2), %v2029_v2  ;;  %v2049_v19 = vld [vmem:[%s2562_s2 + $0x20] sm:$0xff] (!%p449_p2)   ;;  %v2056_v23 = vld [vmem:[%s2570_s10 + $0x10] ss:$8 sps:$4 sm:$0xff] (!%p449_p2)   ;;  %v2058_v24 = vld [vmem:[%s2570_s10 + $0x14] ss:$8 sps:$4 sm:$0xff] (!%p449_p2)  }
   0xc   : > { %1896 = vmatprep.subr.bf16.mxu0 (!%p449_p2), %v2040_v14  ;;  %v2052_v20 = vld [vmem:[%s2570_s10] ss:$8 sps:$4 sm:$0xff] (!%p449_p2)   ;;  %v2054_v21 = vld [vmem:[%s2570_s10 + $0x4] ss:$8 sps:$4 sm:$0xff] (!%p449_p2)   ;;  %v2062_v26 = vld [vmem:[%s2562_s2 + $0x30] sm:$0xff] (!%p449_p2)  }
   0xd   : > { %s2577_s19 = smov (!%p503_p3, %s1710_s19), 3  ;;  %1879 = vmatpush3.bf16.msra.mxu1 %v2031_v4  ;;  %v2061_v25 = vld [vmem:[%s2570_s10 + $0x24] ss:$8 sps:$4 sm:$0xff]   ;;  %v2063_v27 = vld [vmem:[%s2562_s2 + $0x38] sm:$0xff]   ;;  %v2059_v28 = vld [vmem:[%s2570_s10 + $0x20] ss:$8 sps:$4 sm:$0xff]  }
   0xe   : > { %s1715_s28 = sshll.u32 %s2577_s19, 2  ;;  %1880 = vmatprep.subr.bf16.mxu1 %v2121_v1  ;;  %v2066_v29 = vld [vmem:[%s2570_s10 + $0x34] ss:$8 sps:$4 sm:$0xff]   ;;  %v2064_v30 = vld [vmem:[%s2570_s10 + $0x30] ss:$8 sps:$4 sm:$0xff]   ;;  %v2038_v38 = vld [vmem:[%s2563_s3] sm:$0xff]  }
   0xf   : > { %s506_s16 = scalar_lea.vmem %s2560_s0, %s1715_s28  ;;  %v2069_v31 = vld [vmem:[%s2570_s10 + $0x44] ss:$8 sps:$4 sm:$0xff]   ;;  %v2067_v32 = vld [vmem:[%s2570_s10 + $0x40] ss:$8 sps:$4 sm:$0xff]   ;;  %v2072_v33 = vld [vmem:[%s2570_s10 + $0x54] ss:$8 sps:$4 sm:$0xff]   ;;  %s519_s30 = scalar_lea.vmem %s2575_s15, %s1715_s28 }
  0x10   : > { %v521_v5 = vld [vmem:[%s506_s16] sm:$0xf]  ;;  %v2070_v34 = vld [vmem:[%s2570_s10 + $0x50] ss:$8 sps:$4 sm:$0xff]   ;;  %v2075_v35 = vld [vmem:[%s2570_s10 + $0x64] ss:$8 sps:$4 sm:$0xff]  }
  0x11   : > { %1873 = vmatmul.mubr.msk.bf16.vlgmr.msra.gmra.mrb[0].mxu0 %vm538_vm1, %v521_v5  ;;  %1881 = vmatpush3.bf16.msra.mxu1 %v2032_v6  ;;  %v2073_v36 = vld [vmem:[%s2570_s10 + $0x60] ss:$8 sps:$4 sm:$0xff]   ;;  %v2043_v44 = vld [vmem:[%s2563_s3 + $0x10] sm:$0xff]   ;;  %v2044_v45 = vld [vmem:[%s2563_s3 + $0x18] sm:$0xff]   ;;  %s1801_s17 = sshll.u32 %s2577_s19, 4  ;;  %s1716_s23 = sshll.u32 %s2577_s19, 3 }
  0x12   : > { %1882 = vmatprep.subr.bf16.mxu1 %v2121_v1  ;;  %1898 = vmatprep.mubr.msk.bf16.mxu0 %vm766_vm3, %v2041_v15  ;;  %v2039_v43 = vld [vmem:[%s2563_s3 + $0x8] sm:$0xff]   ;;  %v2047_v46 = vld [vmem:[%s2563_s3 + $0x20] sm:$0xff]   ;;  %v2051_v48 = vld [vmem:[%s2563_s3 + $0x30] sm:$0xff]   ;;  %s515_s22 = scalar_lea.vmem %s2574_s14, %s1801_s17  ;;  %s510_s26 = scalar_lea.vmem %s2573_s13, %s1716_s23 }
  0x13   : > { %1897 = vmatpush3.bf16.msra.mxu0 %v2040_v14  ;;  %v2048_v47 = vld [vmem:[%s2563_s3 + $0x28] sm:$0xff]   ;;  %v2055_v49 = vld [vmem:[%s2563_s3 + $0x38] sm:$0xff]   ;;  %v2390_v54 = vld [vmem:[%s2567_s7] ss:$0 sm:$0xff] }
  0x14   : > { %1207 = vmatprep.subr.bf16.mxu0 %v2054_v21  ;;  %v2078_v50 = vld [vmem:[%s2570_s10 + $0x74] ss:$8 sps:$4 sm:$0xff]   ;;  %v2076_v51 = vld [vmem:[%s2570_s10 + $0x70] ss:$8 sps:$4 sm:$0xff]  }
  0x15   : > { %1883 = vmatpush3.bf16.msra.mxu1 %v2033_v7 }
  0x16   : > { %1884 = vmatprep.subr.bf16.mxu1 %v2121_v1 }
  0x19   : > { %1885 = vmatpush3.bf16.msra.mxu1 %v2034_v8  ;;  %1899 = vmatmul.mubr.msk.bf16.vlgmr.msra.gmra.mrb[4].mxu0 %vm766_vm3, %v2042_v16 }
  0x1a   : > { %1886 = vmatprep.subr.bf16.mxu1 %v2121_v1  ;;  %1902 = vmatprep.mubr.msk.bf16.mxu0 %vm766_vm3, %v2045_v17 }
  0x1b   : > { %1208 = vmatpush1.bf16.msra.mxu0 %v2052_v20 }
  0x1c   : > { %1209 = vmatprep.subr.bf16.mxu0 %v2058_v24 }
  0x1d   : > { %1887 = vmatpush3.bf16.msra.mxu1 %v2035_v9 }
  0x1e   : > { %1888 = vmatprep.subr.bf16.mxu1 %v2121_v1 }
  0x1f   : > { %1210 = vmatpush1.bf16.msra.mxu0 %v2056_v23 }
  0x20   : > { %1211 = vmatprep.subr.bf16.mxu0 %v2061_v25 }
  0x21   : > { %1889 = vmatpush3.bf16.msra.mxu1 %v2036_v10  ;;  %1903 = vmatmul.mubr.msk.bf16.gmra.mrb[8].mxu0 %vm766_vm3, %v2046_v18 }
  0x22   : > { %1890 = vmatprep.subr.bf16.mxu1 %v2121_v1  ;;  %1906 = vmatprep.mubr.msk.bf16.mxu0 %vm766_vm3, %v2049_v19 }
  0x23   : > { %1212 = vmatpush1.bf16.msra.mxu0 %v2059_v28 }
  0x24   : > { %1213 = vmatprep.subr.bf16.mxu0 %v2066_v29 }
  0x25   : > { %1891 = vmatpush3.bf16.msra.mxu1 %v2037_v11 }
  0x26   : > { %2016 = vmatprep.subr.msk.bf16.mxu1 %vm993_vm2, %v920_v12 }
  0x27   : > { %1214 = vmatpush1.bf16.msra.mxu0 %v2064_v30 }
  0x28   : > { %1215 = vmatprep.subr.bf16.mxu0 %v2069_v31 }
  0x29   : > { %1907 = vmatmul.mubr.msk.bf16.gmra.mrb[12].mxu0 %vm766_vm3, %v2050_v22 }
  0x2a   : > { %1910 = vmatprep.mubr.msk.bf16.mxu0 %vm766_vm3, %v2062_v26 }
  0x2b   : > { %1216 = vmatpush1.bf16.msra.mxu0 %v2067_v32 }
  0x2c   : > { %1217 = vmatprep.subr.bf16.mxu0 %v2072_v33 }
  0x2f   : > { %1218 = vmatpush1.bf16.msra.mxu0 %v2070_v34 }
  0x30   : > { %1219 = vmatprep.subr.bf16.mxu0 %v2075_v35 }
  0x31   : > { %1911 = vmatmul.mubr.msk.bf16.gmra.mrb[16].mxu0 %vm766_vm3, %v2063_v27 }
  0x32   : > { %1239 = vmatprep.mubr.bf16.mxu0 %v2123_v52 }
  0x33   : > { %1220 = vmatpush1.bf16.msra.mxu0 %v2073_v36 }
  0x34   : > { %1221 = vmatprep.subr.bf16.mxu0 %v2078_v50 }
  0x37   : > { %1222 = vmatpush1.bf16.msra.mxu0 %v2076_v51 }
  0x38   : > { %1952 = vmatprep.subr.bf16.mxu0 %v2121_v1 }
  0xe4   : > { %v576_v37 = vpop.f32.mrb[0].mxu0 }
  0xe5   : > { %v582_v39 = vpack.c.bf16 %v576_v37, %v576_v37  ;;  %v1874_v40 = vpop.f32.mrb[1].mxu0 }
  0xe6   : > { %v579_v41 = vpop.f32.mrb[2].mxu0 }
  0xe7   : > { %v1875_v42 = vpop.f32.mrb[3].mxu0  ;;  %1893 = vmatmul.mubr.bf16.vlgmr.msra.gmra.mrb[0].mxu1 %v582_v39 }
  0xe8   : > { %1915 = vmatpush3.bf16.msra.mxu1 %v995_v13  ;;  %1916 = vmatprep.mubr.msk.bf16.mxu1 %vm968_vm4, %v2038_v38 }
  0xe9   : > { %1932 = vmatprep.subr.bf16.mxu1 %v2121_v1 }
  0xec   : > { %v1900_v53 = vpop.f32.mrb[4].mxu0 }
  0xed   : > { %v834_v55 = vadd.f32 %v1900_v53, %v2390_v54  ;;  %v825_v56 = vpop.f32.mrb[5].mxu0 }
  0xee   : > { %v826_v57 = vadd.f32 %v2390_v54, %v825_v56  ;;  %v1901_v58 = vpop.f32.mrb[6].mxu0  ;;  %v1750_v56 = vld [vmem:[%s2569_s9] ss:$0 sm:$0xff] }
  0xef   : > { %1917 = vmatmul.mubr.msk.bf16.vlgmr.msra.gmra.mrb[4].mxu1 %vm968_vm4, %v2039_v43  ;;  %v890_v59 = vmax.f32 %v834_v55, 0.0  ;;  %v837_v60 = vadd.f32 %v1901_v58, %v2390_v54  ;;  %v828_v61 = vpop.f32.mrb[7].mxu0 }
  0xf0   : > { %1920 = vmatprep.mubr.msk.bf16.mxu1 %vm968_vm4, %v2043_v44  ;;  %v888_v62 = vmax.f32 %v826_v57, 0.0  ;;  %v829_v63 = vadd.f32 %v2390_v54, %v828_v61 }
  0xf1   : > { %v891_v0 = vmax.f32 %v837_v60, 0.0 }
  0xf2   : > { %v889_v2 = vmax.f32 %v829_v63, 0.0 }
  0xf3   : > { %v2396_v3 = vpack.c.bf16 %v891_v0, %v890_v59 }
  0xf4   : > { %v2398_v4 = vpack.c.bf16 %v889_v2, %v888_v62  ;;  %v1904_v5 = vpop.f32.mrb[8].mxu0 }
  0xf5   : > { %v841_v6 = vpop.f32.mrb[9].mxu0  ;;  %v850_v7 = vadd.f32 %v1904_v5, %v2390_v54 }
  0xf6   : > { %1933 = vmatpush3.bf16.xpose.msra.mxu1 %v2398_v4  ;;  %v842_v8 = vadd.f32 %v2390_v54, %v841_v6  ;;  %v1905_v9 = vpop.f32.mrb[10].mxu0 }
  0xf7   : > { %1921 = vmatmul.mubr.msk.bf16.gmra.mrb[8].mxu1 %vm968_vm4, %v2044_v45  ;;  %1934 = vmatprep.subr.bf16.mxu1 %v2121_v1  ;;  %v894_v10 = vmax.f32 %v850_v7, 0.0  ;;  %v853_v11 = vadd.f32 %v1905_v9, %v2390_v54  ;;  %v844_v12 = vpop.f32.mrb[11].mxu0 }
  0xf8   : > { %1924 = vmatprep.mubr.msk.bf16.mxu1 %vm968_vm4, %v2047_v46  ;;  %v892_v13 = vmax.f32 %v842_v8, 0.0  ;;  %v845_v14 = vadd.f32 %v2390_v54, %v844_v12 }
  0xf9   : > { %v895_v15 = vmax.f32 %v853_v11, 0.0 }
  0xfa   : > { %v893_v16 = vmax.f32 %v845_v14, 0.0 }
  0xfb   : > { %v2408_v17 = vpack.c.bf16 %v895_v15, %v894_v10 }
  0xfc   : > { %v2410_v18 = vpack.c.bf16 %v893_v16, %v892_v13  ;;  %v1908_v19 = vpop.f32.mrb[12].mxu0 }
  0xfd   : > { %v857_v20 = vpop.f32.mrb[13].mxu0  ;;  %v866_v21 = vadd.f32 %v1908_v19, %v2390_v54 }
  0xfe   : > { %1935 = vmatpush3.bf16.xpose.msra.mxu1 %v2396_v3  ;;  %v858_v22 = vadd.f32 %v2390_v54, %v857_v20  ;;  %v1909_v23 = vpop.f32.mrb[14].mxu0 }
  0xff   : > { %1925 = vmatmul.mubr.msk.bf16.gmra.mrb[12].mxu1 %vm968_vm4, %v2048_v47  ;;  %1936 = vmatprep.subr.bf16.mxu1 %v2121_v1  ;;  %v898_v24 = vmax.f32 %v866_v21, 0.0  ;;  %v869_v25 = vadd.f32 %v1909_v23, %v2390_v54  ;;  %v860_v26 = vpop.f32.mrb[15].mxu0  ;;  %v1723_v47 = vld [vmem:[%s2565_s5] ss:$0 sm:$0xff] }
 0x100   : > { %1928 = vmatprep.mubr.msk.bf16.mxu1 %vm968_vm4, %v2051_v48  ;;  %v896_v27 = vmax.f32 %v858_v22, 0.0  ;;  %v861_v28 = vadd.f32 %v2390_v54, %v860_v26 }
 0x101   : > { %v899_v29 = vmax.f32 %v869_v25, 0.0 }
 0x102   : > { %v897_v30 = vmax.f32 %v861_v28, 0.0 }
 0x103   : > { %v2420_v31 = vpack.c.bf16 %v899_v29, %v898_v24 }
 0x104   : > { %v2422_v32 = vpack.c.bf16 %v897_v30, %v896_v27  ;;  %v1912_v33 = vpop.f32.mrb[16].mxu0 }
 0x105   : > { %v873_v34 = vpop.f32.mrb[17].mxu0  ;;  %v882_v35 = vadd.f32 %v1912_v33, %v2390_v54 }
 0x106   : > { %1937 = vmatpush3.bf16.xpose.msra.mxu1 %v2410_v18  ;;  %v874_v36 = vadd.f32 %v2390_v54, %v873_v34  ;;  %v1913_v37 = vpop.f32.mrb[18].mxu0 }
 0x107   : > { %1929 = vmatmul.mubr.msk.bf16.gmra.mrb[16].mxu1 %vm968_vm4, %v2055_v49  ;;  %1938 = vmatprep.subr.bf16.mxu1 %v2121_v1  ;;  %v902_v38 = vmax.f32 %v882_v35, 0.0  ;;  %v885_v39 = vadd.f32 %v1913_v37, %v2390_v54  ;;  %v876_v40 = vpop.f32.mrb[19].mxu0 }
 0x108   : > { %1948 = vmatprep.mubr.msk.bf16.mxu1 %vm2122_vm0, %v2121_v1  ;;  %v900_v41 = vmax.f32 %v874_v36, 0.0  ;;  %v877_v42 = vadd.f32 %v2390_v54, %v876_v40 }
 0x109   : > { %v903_v43 = vmax.f32 %v885_v39, 0.0 }
 0x10a   : > { %v901_v44 = vmax.f32 %v877_v42, 0.0 }
 0x10b   : > { %v2432_v45 = vpack.c.bf16 %v903_v43, %v902_v38 }
 0x10c   : > { %v2434_v46 = vpack.c.bf16 %v901_v44, %v900_v41 }
 0x10e   : > { %1939 = vmatpush3.bf16.xpose.msra.mxu1 %v2408_v17 }
 0x10f   : > { %1940 = vmatprep.subr.bf16.mxu1 %v2121_v1 }
 0x116   : > { %1941 = vmatpush3.bf16.xpose.msra.mxu1 %v2422_v32 }
 0x117   : > { %1942 = vmatprep.subr.bf16.mxu1 %v2121_v1 }
 0x11e   : > { %1943 = vmatpush3.bf16.xpose.msra.mxu1 %v2420_v31 }
 0x11f   : > { %1944 = vmatprep.subr.bf16.mxu1 %v2121_v1 }
 0x126   : > { %1945 = vmatpush3.bf16.xpose.msra.mxu1 %v2434_v46 }
 0x127   : > { %1946 = vmatprep.subr.bf16.mxu1 %v2121_v1 }
 0x12e   : > { %1947 = vmatpush3.bf16.xpose.msra.mxu1 %v2432_v45 }
 0x12f   : > { %1972 = vmatprep.subr.bf16.mxu1 %v2121_v1 }
 0x1ba   : > { %v688_v48 = vpop.f32.mrb[0].mxu1 }
 0x1bb   : > { %v689_v49 = vadd.f32 %v1723_v47, %v688_v48  ;;  %v1894_v50 = vpop.f32.mrb[1].mxu1 }
 0x1bc   : > { %v691_v51 = vpop.f32.mrb[2].mxu1 }
 0x1bd   : > { %v694_v53 = vmax.f32 %v689_v49, 0.0  ;;  %v1895_v54 = vpop.f32.mrb[3].mxu1 }
 0x1bf   : > { %v1110_v55 = vpack.c.bf16 %v694_v53, %v694_v53 }
 0x1c1   : > { %1240 = vmatmul.mubr.bf16.vlgmr.msra.gmra.mrb[20].mxu0 %v1110_v55 }
 0x1c2   : > { %v1918_v57 = vpop.f32.mrb[4].mxu1  ;;  %1968 = vmatprep.mubr.msk.bf16.mxu0 %vm2122_vm0, %v2121_v1 }
 0x1c3   : > { %v1040_v58 = vadd.f32 %v1918_v57, %v1750_v56  ;;  %v1031_v59 = vpop.f32.mrb[5].mxu1 }
 0x1c4   : > { %v1032_v60 = vadd.f32 %v1750_v56, %v1031_v59  ;;  %v1919_v61 = vpop.f32.mrb[6].mxu1 }
 0x1c5   : > { %v1096_v62 = vmax.f32 %v1040_v58, 0.0  ;;  %v1043_v63 = vadd.f32 %v1919_v61, %v1750_v56  ;;  %v1034_v0 = vpop.f32.mrb[7].mxu1 }
 0x1c6   : > { %v1094_v2 = vmax.f32 %v1032_v60, 0.0  ;;  %v1035_v5 = vadd.f32 %v1750_v56, %v1034_v0 }
 0x1c7   : > { %v1097_v6 = vmax.f32 %v1043_v63, 0.0 }
 0x1c8   : > { %v1095_v7 = vmax.f32 %v1035_v5, 0.0 }
 0x1c9   : > { %v2448_v8 = vpack.c.bf16 %v1097_v6, %v1096_v62 }
 0x1ca   : > { %v2450_v9 = vpack.c.bf16 %v1095_v7, %v1094_v2  ;;  %v1922_v10 = vpop.f32.mrb[8].mxu1 }
 0x1cb   : > { %v1056_v11 = vadd.f32 %v1922_v10, %v1750_v56  ;;  %v1047_v12 = vpop.f32.mrb[9].mxu1 }
 0x1cc   : > { %1953 = vmatpush3.bf16.xpose.msra.mxu0 %v2450_v9  ;;  %v1048_v13 = vadd.f32 %v1750_v56, %v1047_v12  ;;  %v1923_v14 = vpop.f32.mrb[10].mxu1 }
 0x1cd   : > { %v1100_v15 = vmax.f32 %v1056_v11, 0.0  ;;  %1954 = vmatprep.subr.bf16.mxu0 %v2121_v1  ;;  %v1059_v16 = vadd.f32 %v1923_v14, %v1750_v56  ;;  %v1050_v19 = vpop.f32.mrb[11].mxu1 }
 0x1ce   : > { %v1098_v20 = vmax.f32 %v1048_v13, 0.0  ;;  %v1051_v21 = vadd.f32 %v1750_v56, %v1050_v19 }
 0x1cf   : > { %v1101_v22 = vmax.f32 %v1059_v16, 0.0 }
 0x1d0   : > { %v1099_v23 = vmax.f32 %v1051_v21, 0.0 }
 0x1d1   : > { %v1314_v24 = vpack.c.bf16 %v1101_v22, %v1100_v15 }
 0x1d2   : > { %v1313_v25 = vpack.c.bf16 %v1099_v23, %v1098_v20  ;;  %v1926_v26 = vpop.f32.mrb[12].mxu1 }
 0x1d3   : > { %v1072_v27 = vadd.f32 %v1926_v26, %v1750_v56  ;;  %v1063_v28 = vpop.f32.mrb[13].mxu1  ;;  %v2081_v26 = vld [vmem:[%s2571_s11 + $0x4] ss:$8 sps:$4 sm:$0xff]  }
 0x1d4   : > { %1955 = vmatpush3.bf16.xpose.msra.mxu0 %v2448_v8  ;;  %v1064_v29 = vadd.f32 %v1750_v56, %v1063_v28  ;;  %v1927_v30 = vpop.f32.mrb[14].mxu1  ;;  %v2082_v28 = vld [vmem:[%s2571_s11 + $0x10] ss:$8 sps:$4 sm:$0xff]  }
 0x1d5   : > { %1956 = vmatprep.subr.bf16.mxu0 %v2121_v1  ;;  %v1104_v33 = vmax.f32 %v1072_v27, 0.0  ;;  %v1075_v34 = vadd.f32 %v1927_v30, %v1750_v56  ;;  %v1066_v35 = vpop.f32.mrb[15].mxu1  ;;  %v2084_v27 = vld [vmem:[%s2571_s11 + $0x14] ss:$8 sps:$4 sm:$0xff]   ;;  %v2085_v30 = vld [vmem:[%s2571_s11 + $0x20] ss:$8 sps:$4 sm:$0xff]  }
 0x1d6   : > { %v1102_v36 = vmax.f32 %v1064_v29, 0.0  ;;  %v1067_v37 = vadd.f32 %v1750_v56, %v1066_v35  ;;  %v2087_v29 = vld [vmem:[%s2571_s11 + $0x24] ss:$8 sps:$4 sm:$0xff]  }
 0x1d7   : > { %v1105_v38 = vmax.f32 %v1075_v34, 0.0  ;;  %v2088_v34 = vld [vmem:[%s2571_s11 + $0x30] ss:$8 sps:$4 sm:$0xff]   ;;  %v2093_v35 = vld [vmem:[%s2571_s11 + $0x44] ss:$8 sps:$4 sm:$0xff]  }
 0x1d8   : > { %v1103_v39 = vmax.f32 %v1067_v37, 0.0  ;;  %v2096_v37 = vld [vmem:[%s2571_s11 + $0x54] ss:$8 sps:$4 sm:$0xff]  }
 0x1d9   : > { %v1316_v40 = vpack.c.bf16 %v1105_v38, %v1104_v33  ;;  %v2090_v33 = vld [vmem:[%s2571_s11 + $0x34] ss:$8 sps:$4 sm:$0xff]   ;;  %v2094_v38 = vld [vmem:[%s2571_s11 + $0x50] ss:$8 sps:$4 sm:$0xff]  }
 0x1da   : > { %v1315_v41 = vpack.c.bf16 %v1103_v39, %v1102_v36  ;;  %v1930_v42 = vpop.f32.mrb[16].mxu1  ;;  %v2091_v36 = vld [vmem:[%s2571_s11 + $0x40] ss:$8 sps:$4 sm:$0xff]   ;;  %v2099_v39 = vld [vmem:[%s2571_s11 + $0x64] ss:$8 sps:$4 sm:$0xff]  }
 0x1db   : > { %v1088_v43 = vadd.f32 %v1930_v42, %v1750_v56  ;;  %v1079_v44 = vpop.f32.mrb[17].mxu1  ;;  %v2100_v42 = vld [vmem:[%s2571_s11 + $0x70] ss:$8 sps:$4 sm:$0xff]  }
 0x1dc   : > { %1957 = vmatpush3.bf16.xpose.msra.mxu0 %v1313_v25  ;;  %v1080_v47 = vadd.f32 %v1750_v56, %v1079_v44  ;;  %v1931_v48 = vpop.f32.mrb[18].mxu1 }
 0x1dd   : > { %1958 = vmatprep.subr.bf16.mxu0 %v2121_v1  ;;  %v1108_v49 = vmax.f32 %v1088_v43, 0.0  ;;  %v1091_v50 = vadd.f32 %v1931_v48, %v1750_v56  ;;  %v1082_v51 = vpop.f32.mrb[19].mxu1 }
 0x1de   : > { %v1106_v53 = vmax.f32 %v1080_v47, 0.0  ;;  %v1083_v54 = vadd.f32 %v1750_v56, %v1082_v51 }
 0x1df   : > { %v1109_v55 = vmax.f32 %v1091_v50, 0.0 }
 0x1e0   : > { %v1107_v57 = vmax.f32 %v1083_v54, 0.0 }
 0x1e1   : > { %v1318_v58 = vpack.c.bf16 %v1109_v55, %v1108_v49 }
 0x1e2   : > { %v1317_v59 = vpack.c.bf16 %v1107_v57, %v1106_v53 }
 0x1e4   : > { %1959 = vmatpush3.bf16.xpose.msra.mxu0 %v1314_v24 }
 0x1e5   : > { %1960 = vmatprep.subr.bf16.mxu0 %v2121_v1 }
 0x1ec   : > { %1961 = vmatpush3.bf16.xpose.msra.mxu0 %v1315_v41 }
 0x1ed   : > { %1962 = vmatprep.subr.bf16.mxu0 %v2121_v1 }
 0x1f4   : > { %1963 = vmatpush3.bf16.xpose.msra.mxu0 %v1316_v40 }
 0x1f5   : > { %1964 = vmatprep.subr.bf16.mxu0 %v2121_v1 }
 0x1fc   : > { %1965 = vmatpush3.bf16.xpose.msra.mxu0 %v1317_v59 }
 0x1fd   : > { %1966 = vmatprep.subr.bf16.mxu0 %v2121_v1 }
 0x204   : > { %1967 = vmatpush3.bf16.xpose.msra.mxu0 %v1318_v58 }
 0x205   : > { %1561 = vmatprep.subr.bf16.mxu0 %v2081_v26 }
 0x294   : > { %v1241_v60 = vpop.f32.mrb[20].mxu0 }
 0x295   : > { %v1256_v61 = vpack.c.bf16 %v1241_v60, %v1241_v60  ;;  %v1243_v56 = vpop.f32.mrb[21].mxu0 }
 0x296   : > { %v1319_v62 = vpack.c.bf16 %v1243_v56, %v1243_v56  ;;  %v1245_v63 = vpop.f32.mrb[22].mxu0 }
 0x297   : > { %v1246_v0 = vpop.f32.mrb[23].mxu0  ;;  %1949 = vmatmul.mubr.bf16.vlgmr.msra.gmra.mrb[20].mxu1 %v1256_v61 }
 0x298   : > { %1973 = vmatpush3.bf16.msra.mxu1 %v2450_v9  ;;  %1969 = vmatmul.mubr.bf16.vlgmr.msra.gmra.mrb[24].mxu0 %v1319_v62  ;;  %v1604_v0 = vld [vmem:[%s510_s26] sm:$0xff] }
 0x299   : > { %1974 = vmatprep.subr.bf16.mxu1 %v2121_v1  ;;  %1988 = vmatprep.mubr.msk.bf16.mxu1 %vm2122_vm0, %v2121_v1 }
 0x29a   : > { %1593 = vmatprep.mubr.bf16.mxu0 %v2123_v52  ;;  %v1297_v52 = vlaneseq }
 0x29c   : > { %1975 = vmatpush3.bf16.msra.mxu1 %v2448_v8  ;;  %v1298_v2 = vand.u32 127, %v1297_v52 }
 0x29d   : > { %1976 = vmatprep.subr.bf16.mxu1 %v2121_v1 }
 0x29e   : > { %vm1360_vm5 = vcmp.lt.s32.totalorder %v1298_v2, 6  ;;  %vm1299_vm6 = vcmp.lt.s32.totalorder %v1298_v2, 10 }
 0x2a0   : > { %1977 = vmatpush3.bf16.msra.mxu1 %v1313_v25  ;;  %v2079_v25 = vld [vmem:[%s2571_s11] ss:$8 sps:$4 sm:$0xff]  }
 0x2a1   : > { %1978 = vmatprep.subr.bf16.mxu1 %v2121_v1  ;;  %1562 = vmatpush1.bf16.msra.mxu0 %v2079_v25 }
 0x2a2   : > { %1563 = vmatprep.subr.bf16.mxu0 %v2084_v27 }
 0x2a4   : > { %1979 = vmatpush3.bf16.msra.mxu1 %v1314_v24 }
 0x2a5   : > { %1980 = vmatprep.subr.bf16.mxu1 %v2121_v1  ;;  %1564 = vmatpush1.bf16.msra.mxu0 %v2082_v28 }
 0x2a6   : > { %1565 = vmatprep.subr.bf16.mxu0 %v2087_v29 }
 0x2a8   : > { %1981 = vmatpush3.bf16.msra.mxu1 %v1315_v41  ;;  %v2102_v41 = vld [vmem:[%s2571_s11 + $0x74] ss:$8 sps:$4 sm:$0xff]  }
 0x2a9   : > { %1982 = vmatprep.subr.bf16.mxu1 %v2121_v1  ;;  %1566 = vmatpush1.bf16.msra.mxu0 %v2085_v30 }
 0x2aa   : > { %1567 = vmatprep.subr.bf16.mxu0 %v2090_v33 }
 0x2ac   : > { %1983 = vmatpush3.bf16.msra.mxu1 %v1316_v40  ;;  %v2097_v40 = vld [vmem:[%s2571_s11 + $0x60] ss:$8 sps:$4 sm:$0xff]  }
 0x2ad   : > { %1984 = vmatprep.subr.bf16.mxu1 %v2121_v1  ;;  %1568 = vmatpush1.bf16.msra.mxu0 %v2088_v34 }
 0x2ae   : > { %1569 = vmatprep.subr.bf16.mxu0 %v2093_v35 }
 0x2b0   : > { %1985 = vmatpush3.bf16.msra.mxu1 %v1317_v59 }
 0x2b1   : > { %1986 = vmatprep.subr.bf16.mxu1 %v2121_v1  ;;  %1570 = vmatpush1.bf16.msra.mxu0 %v2091_v36 }
 0x2b2   : > { %1571 = vmatprep.subr.bf16.mxu0 %v2096_v37 }
 0x2b4   : > { %1987 = vmatpush3.bf16.msra.mxu1 %v1318_v58 }
 0x2b5   : > { %1992 = vmatprep.subr.bf16.mxu1 %v2121_v1  ;;  %1572 = vmatpush1.bf16.msra.mxu0 %v2094_v38 }
 0x2b6   : > { %1573 = vmatprep.subr.bf16.mxu0 %v2099_v39 }
 0x2b9   : > { %1574 = vmatpush1.bf16.msra.mxu0 %v2097_v40 }
 0x2ba   : > { %1575 = vmatprep.subr.bf16.mxu0 %v2102_v41 }
 0x2bd   : > { %1576 = vmatpush1.bf16.msra.mxu0 %v2100_v42 }
 0x36a   : > { %v1291_v5 = vpop.f32.mrb[20].mxu1 }
 0x36b   : > { %v1950_v6 = vpop.f32.mrb[21].mxu1  ;;  %v1354_v7 = vpop.f32.mrb[24].mxu0  ;;  %v1300_v14 = vsel %vm1299_vm6, %v1291_v5, -1e+30 }
 0x36c   : > { %v1294_v8 = vpop.f32.mrb[22].mxu1  ;;  %v1970_v9 = vpop.f32.mrb[25].mxu0  ;;  %v1361_v10 = vsel %vm1360_vm5, %v1354_v7, -1e+30 }
 0x36d   : > { %1362 = vmax.xlane.f32.xlu0 %v1361_v10  ;;  %v1951_v11 = vpop.f32.mrb[23].mxu1  ;;  %v1357_v12 = vpop.f32.mrb[26].mxu0 }
 0x36e   : > { %v1971_v13 = vpop.f32.mrb[27].mxu0 }
 0x371   : > { %1301 = vmax.xlane.f32.xlu0 %v1300_v14 }
 0x3fa   : > { %v1363_v15 = vpop.xlane.xlu0 %1362 }
 0x3fb   : > { %v1364_v16 = vsub.f32 %v1361_v10, %v1363_v15 }
 0x3fd   : > { %v1365_v19 = vmul.f32 1.442695, %v1364_v16 }
 0x3fe   : > { %v1302_v20 = vpop.xlane.xlu0 %1301 }
 0x3ff   : > { %2103 = vpow2.f32 %v1365_v19  ;;  %v1303_v21 = vsub.f32 %v1300_v14, %v1302_v20 }
 0x401   : > { %v1304_v22 = vmul.f32 1.442695, %v1303_v21 }
 0x403   : > { %2105 = vpow2.f32 %v1304_v22 }
 0x409   : > { %v2104_v23 = vpop.eup %2103 }
 0x40a   : > { %1367 = vadd.xlane.f32.xlu1 %v2104_v23 }
 0x40d   : > { %v2106_v24 = vpop.eup %2105 }
 0x40e   : > { %1306 = vadd.xlane.f32.xlu1 %v2106_v24 }
 0x497   : > { %v1368_v43 = vpop.xlane.xlu1 %1367 }
 0x498   : > { %2107 = vrcp.f32 %v1368_v43 }
 0x49b   : > { %v1307_v49 = vpop.xlane.xlu1 %1306 }
 0x49c   : > { %2109 = vrcp.f32 %v1307_v49 }
 0x4a2   : > { %v2108_v44 = vpop.eup %2107 }
 0x4a3   : > { %v1370_v47 = vmul.f32 %v2108_v44, %v2104_v23 }
 0x4a5   : > { %v1371_v48 = vpack.c.bf16 %v1370_v47, %v1370_v47 }
 0x4a7   : > { %1989 = vmatmul.mubr.bf16.vlgmr.msra.gmra.mrb[24].mxu1 %v1371_v48 }
 0x4a8   : > { %1993 = vmatpush3.bf16.msra.mxu1 %v2398_v4  ;;  %2008 = vmatprep.mubr.msk.bf16.mxu1 %vm2122_vm0, %v2121_v1 }
 0x4a9   : > { %1994 = vmatprep.subr.bf16.mxu1 %v2121_v1 }
 0x4ac   : > { %1995 = vmatpush3.bf16.msra.mxu1 %v2396_v3  ;;  %v2110_v3 = vpop.eup %2109 }
 0x4ad   : > { %1996 = vmatprep.subr.bf16.mxu1 %v2121_v1  ;;  %v1309_v4 = vmul.f32 %v2110_v3, %v2106_v24 }
 0x4b0   : > { %1997 = vmatpush3.bf16.msra.mxu1 %v2410_v18 }
 0x4b1   : > { %1998 = vmatprep.subr.bf16.mxu1 %v2121_v1 }
 0x4b4   : > { %1999 = vmatpush3.bf16.msra.mxu1 %v2408_v17  ;;  %v1310_v17 = vpack.c.bf16 %v1309_v4, %v1309_v4 }
 0x4b5   : > { %2000 = vmatprep.subr.bf16.mxu1 %v2121_v1 }
 0x4b8   : > { %2001 = vmatpush3.bf16.msra.mxu1 %v2422_v32 }
 0x4b9   : > { %2002 = vmatprep.subr.bf16.mxu1 %v2121_v1 }
 0x4bc   : > { %2003 = vmatpush3.bf16.msra.mxu1 %v2420_v31  ;;  %v1472_v31 = vshrl.u32 %v1297_v52, 7 }
 0x4bd   : > { %2004 = vmatprep.subr.bf16.mxu1 %v2121_v1 }
 0x4be   : > { %v1473_v54 = vsub.s32 0, %v1472_v31  ;;  %v1477_v55 = vsub.s32 1, %v1472_v31 }
 0x4c0   : > { %2005 = vmatpush3.bf16.msra.mxu1 %v2434_v46  ;;  %v1469_v46 = vld [vmem:[%s2572_s12] sm:$0x3] }
 0x4c1   : > { %2006 = vmatprep.subr.bf16.mxu1 %v2121_v1  ;;  %v1474_v1 = vrot.slane %v1469_v46, %v1473_v54 }
 0x4c4   : > { %2007 = vmatpush3.bf16.msra.mxu1 %v2432_v45  ;;  %v1478_v45 = vrot.slane %v1469_v46, %v1477_v55 }
 0x4c7   : > { %2009 = vmatmul.mubr.bf16.vlgmr.msra.gmra.mrb[24].mxu1 %v1310_v17 }
 0x59a   : > { %v1446_v18 = vpop.f32.mrb[24].mxu1 }
 0x59b   : > { %v1452_v50 = vpack.c.bf16 %v1446_v18, %v1446_v18  ;;  %v2010_v32 = vpop.f32.mrb[25].mxu1 }
 0x59c   : > { %v1449_v51 = vpop.f32.mrb[26].mxu1 }
 0x59d   : > { %v2011_v53 = vpop.f32.mrb[27].mxu1  ;;  %1594 = vmatmul.mubr.bf16.vlgmr.msra.gmra.mrb[28].mxu0 %v1452_v50 }
 0x670   : > { %v1595_v57 = vpop.f32.mrb[28].mxu0 }
 0x671   : > { %v1596_v58 = vadd.f32 %v1595_v57, %v1474_v1  ;;  %v1597_v59 = vpop.f32.mrb[29].mxu0 }
 0x672   : > { %v1598_v60 = vadd.f32 %v1597_v59, %v1478_v45  ;;  %v1599_v61 = vpop.f32.mrb[30].mxu0 }
 0x673   : > { %1602 = vst [vmem:[%s515_s22] sm:$0xff] %v1596_v58  ;;  %v1600_v56 = vpop.f32.mrb[31].mxu0 }
 0x674   : > { %1603 = vst [vmem:[%s515_s22 + $0x8] sm:$0xff] %v1598_v60  ;;  %v1605_v62 = vmul.f32 0.5, %v1598_v60 }
 0x676   : > { %v1606_v63 = vmul.f32 1.442695, %v1605_v62 }
 0x678   : > { %2111 = vpow2.f32 %v1606_v63 }
 0x682   : > { %v2112_v52 = vpop.eup %2111 }
 0x683   : > { %v1608_v2 = vmul.f32 %v2112_v52, %v1604_v0 }
 0x685   : > { %v1609_v5 = vadd.f32 %v1608_v2, %v1596_v58 }
 0x687   : > { %v1610_v6 = vpack.c.bf16 %v1609_v5, %v1609_v5 }
 0x689   : > { %1611 = vst [vmem:[%s519_s30] sm:$0xf] %v1610_v6 }
 0x68a PF: > { %s26_s18 = sadd.s32 1, %s2119_s18  }
 0x68b   : > { %p23_p4 = scmp.ge.s32.totalorder %s26_s18, 6  }
 0x68d   :  { %25 = sbr.rel (!%p23_p4) target bundleno = 1 (0x1), region = 121 }

</bundles_post_ra>
